<compile_context>
chip_gen: v7x
topology: tpu7x:2x2x1
jax: 0.10.0
libtpu: 0.0.40
codegen_flags: <defaults>
</compile_context>

<pallas_src>
import functools

import jax
import jax.numpy as jnp
from jax import lax
from jax.experimental import pallas as pl
from jax.experimental.pallas import tpu as pltpu


# --------------------------- small helpers ----------------------------------

def _round_up(x, m):
    return ((x + m - 1) // m) * m


@functools.lru_cache(maxsize=None)
def _vmem_limit_bytes():
    # Re-budget per generation: ~3/4 of physical VMEM (v5e/v6e: 128 MiB, v7x: 64 MiB).
    try:
        cap = int(pltpu.get_tpu_info().vmem_capacity_bytes)
        return max(32 * 1024 * 1024, (cap * 3) // 4)
    except Exception:
        return 48 * 1024 * 1024


def _permute_gates(w, hp):
    """Reorder torch gate blocks [i, f, g, o] -> [i, f, o, g] along axis 0."""
    return jnp.concatenate([w[: 2 * hp], w[3 * hp: 4 * hp], w[2 * hp: 3 * hp]], axis=0)


def prepare_lstm_params(raw_layers):
    """Convert torch-layout LSTM params to kernel form (done once, outside the hot path)."""
    prepared = []
    for p in raw_layers:
        hp = p["w_hh_f"].shape[1]

        def prep_w(w, hp=hp):
            return _permute_gates(w, hp).T.astype(jnp.bfloat16)   # [In, 4Hp] bf16

        prepared.append({
            "w_ih_f_t": prep_w(p["w_ih_f"]),
            "w_ih_b_t": prep_w(p["w_ih_b"]),
            "w_hh_f_t": prep_w(p["w_hh_f"]),
            "w_hh_b_t": prep_w(p["w_hh_b"]),
            "b_f": _permute_gates(p["b_ih_f"] + p["b_hh_f"], hp).astype(jnp.float32),
            "b_b": _permute_gates(p["b_ih_b"] + p["b_hh_b"], hp).astype(jnp.float32),
        })
    return prepared


def _pick_time_chunk(t_len, n, hp, budget_bytes=8 * 1024 * 1024):
    """Largest divisor of t_len whose chunked blocks (double-buffered) fit the budget."""
    per_step = 80 * n * hp  # (xg_f + xg_b + out_f + out_b) f32, x2 buffers
    c = max(1, min(t_len, budget_bytes // max(per_step, 1)))
    while t_len % c:
        c -= 1
    return c


# --------------------------- Pallas kernels ---------------------------------

def _dual_linear_kernel(x_ref, wf_ref, wb_ref, bf_ref, bb_ref, of_ref, ob_ref):
    """Fused input projection for both LSTM directions (one x load, two MXU matmuls)."""
    x = x_ref[...]
    of_ref[...] = jnp.dot(x, wf_ref[...], preferred_element_type=jnp.float32) + bf_ref[...]
    ob_ref[...] = jnp.dot(x, wb_ref[...], preferred_element_type=jnp.float32) + bb_ref[...]


def _dual_linear(x, wf_t, wb_t, b_f, b_b, tile_m=512):
    """x: [M, In] f32 -> (xg_f, xg_b) each [M, 4Hp] f32. Row-tiled, parallel grid."""
    m, k = x.shape
    g4 = wf_t.shape[1]
    tile = min(tile_m, _round_up(m, 8))
    mp = _round_up(m, tile)
    if mp != m:
        x = jnp.pad(x, ((0, mp - m), (0, 0)))
    x = x.astype(jnp.bfloat16)

    of, ob = pl.pallas_call(
        _dual_linear_kernel,
        grid=(mp // tile,),
        in_specs=[pl.BlockSpec((tile, k), lambda i: (i, 0)),
                  pl.BlockSpec((k, g4), lambda i: (0, 0)),
                  pl.BlockSpec((k, g4), lambda i: (0, 0)),
                  pl.BlockSpec((1, g4), lambda i: (0, 0)),
                  pl.BlockSpec((1, g4), lambda i: (0, 0))],
        out_specs=(pl.BlockSpec((tile, g4), lambda i: (i, 0)),
                   pl.BlockSpec((tile, g4), lambda i: (i, 0))),
        out_shape=(jax.ShapeDtypeStruct((mp, g4), jnp.float32),
                   jax.ShapeDtypeStruct((mp, g4), jnp.float32)),
        compiler_params=pltpu.CompilerParams(
            dimension_semantics=("parallel",),
            vmem_limit_bytes=_vmem_limit_bytes()),
    )(x, wf_t, wb_t, b_f.reshape(1, g4), b_b.reshape(1, g4))

    if mp != m:
        of, ob = of[:m], ob[:m]
    return of, ob


def _bilstm_kernel(len_ref, xgf_ref, xgb_ref, whf_ref, whb_ref,
                   out_f_ref, out_b_ref, h_fin_ref, c_fin_ref, state_scr,
                   *, seq_len, chunk, hp):
    """Fused bidirectional LSTM recurrence over one time chunk.

    Grid axis = time chunks (sequential).  Forward direction consumes chunk c,
    backward direction consumes the mirrored chunk (nchunks-1-c) supplied by the
    BlockSpec index_map, so both directions advance together in one fori_loop
    with h/c states carried in vregs / VMEM scratch.
    Length masking reproduces pack/unpack semantics: padded steps freeze the
    state and write zeros to the memory bank.
    """
    c_idx = pl.program_id(0)

    @pl.when(c_idx == 0)
    def _():
        state_scr[...] = jnp.zeros_like(state_scr)

    lengths = len_ref[...]              # [N, 1] int32
    base = c_idx * chunk

    def cell(g, c_prev):
        s = jax.nn.sigmoid(g[:, :3 * hp])          # [i | f | o]
        z = jnp.tanh(g[:, 3 * hp:])                # g (cell candidate)
        ig, fg, og = s[:, :hp], s[:, hp:2 * hp], s[:, 2 * hp:3 * hp]
        c_new = fg * c_prev + ig * z
        return og * jnp.tanh(c_new), c_new

    def step(i, carry):
        h_f, c_f, h_b, c_b = carry
        t_f = base + i                      # forward absolute time
        t_b = (seq_len - 1) - t_f           # backward absolute time

        g_f = xgf_ref[i] + jnp.dot(h_f.astype(jnp.bfloat16), whf_ref[...],
                                   preferred_element_type=jnp.float32)
        g_b = xgb_ref[chunk - 1 - i] + jnp.dot(h_b.astype(jnp.bfloat16), whb_ref[...],
                                               preferred_element_type=jnp.float32)

        hf_n, cf_n = cell(g_f, c_f)
        hb_n, cb_n = cell(g_b, c_b)

        m_f = t_f < lengths                 # [N, 1] bool
        m_b = t_b < lengths
        hf_n = jnp.where(m_f, hf_n, h_f)
        cf_n = jnp.where(m_f, cf_n, c_f)
        hb_n = jnp.where(m_b, hb_n, h_b)
        cb_n = jnp.where(m_b, cb_n, c_b)

        out_f_ref[i] = jnp.where(m_f, hf_n, 0.0)
        out_b_ref[chunk - 1 - i] = jnp.where(m_b, hb_n, 0.0)
        return hf_n, cf_n, hb_n, cb_n

    carry0 = (state_scr[0], state_scr[1], state_scr[2], state_scr[3])
    hf, cf, hb, cb = lax.fori_loop(0, chunk, step, carry0, unroll=(chunk <= 8))

    state_scr[0] = hf
    state_scr[1] = cf
    state_scr[2] = hb
    state_scr[3] = cb

    # Resident final-state blocks; the last chunk's write is the true final state.
    h_fin_ref[0] = hf
    h_fin_ref[1] = hb
    c_fin_ref[0] = cf
    c_fin_ref[1] = cb


def _bilstm_layer(x, lengths, lp):
    """One bidirectional LSTM layer.  x: [T, N, In] -> (out [T,N,2Hp], h [2,N,Hp], c [2,N,Hp])."""
    t_len, n, in_sz = x.shape
    hp = lp["w_hh_f_t"].shape[0]
    g4 = 4 * hp

    xg_f, xg_b = _dual_linear(x.reshape(t_len * n, in_sz),
                              lp["w_ih_f_t"], lp["w_ih_b_t"], lp["b_f"], lp["b_b"])
    xg_f = xg_f.reshape(t_len, n, g4)
    xg_b = xg_b.reshape(t_len, n, g4)

    chunk = _pick_time_chunk(t_len, n, hp)
    nchunks = t_len // chunk
    lengths2d = lengths.reshape(n, 1).astype(jnp.int32)

    kernel = functools.partial(_bilstm_kernel, seq_len=t_len, chunk=chunk, hp=hp)

    out_f, out_b, h_fin, c_fin = pl.pallas_call(
        kernel,
        grid=(nchunks,),
        in_specs=[
            pl.BlockSpec((n, 1), lambda c: (0, 0)),                              # lengths
            pl.BlockSpec((chunk, n, g4), lambda c: (c, 0, 0)),                   # xg forward chunk
            pl.BlockSpec((chunk, n, g4), lambda c: (nchunks - 1 - c, 0, 0)),     # xg backward (mirrored)
            pl.BlockSpec((hp, g4), lambda c: (0, 0)),                            # W_hh fwd^T (bf16)
            pl.BlockSpec((hp, g4), lambda c: (0, 0)),                            # W_hh bwd^T (bf16)
        ],
        out_specs=(
            pl.BlockSpec((chunk, n, hp), lambda c: (c, 0, 0)),                   # fwd hidden
            pl.BlockSpec((chunk, n, hp), lambda c: (nchunks - 1 - c, 0, 0)),     # bwd hidden
            pl.BlockSpec((2, n, hp), lambda c: (0, 0, 0)),                       # h_n (resident)
            pl.BlockSpec((2, n, hp), lambda c: (0, 0, 0)),                       # c_n (resident)
        ),
        out_shape=(
            jax.ShapeDtypeStruct((t_len, n, hp), jnp.float32),
            jax.ShapeDtypeStruct((t_len, n, hp), jnp.float32),
            jax.ShapeDtypeStruct((2, n, hp), jnp.float32),
            jax.ShapeDtypeStruct((2, n, hp), jnp.float32),
        ),
        scratch_shapes=[pltpu.VMEM((4, n, hp), jnp.float32)],
        compiler_params=pltpu.CompilerParams(
            dimension_semantics=("arbitrary",),
            vmem_limit_bytes=_vmem_limit_bytes()),
    )(lengths2d, xg_f, xg_b, lp["w_hh_f_t"], lp["w_hh_b_t"])

    memory_bank = jnp.concatenate([out_f, out_b], axis=-1)     # [T, N, 2Hp]
    return memory_bank, h_fin, c_fin


# --------------------------- RNNEncoder.forward ------------------------------

def rnn_encoder_forward(prepared_layers, src_emb, lengths=None):
    """Mirrors RNNEncoder.forward (rnn_type='LSTM', bidirectional=True).

    src_emb: [T, N, E] time-major embeddings; lengths: [N] int32 or None.
    Returns (memory_bank [T, N, 2*Hp], (h_n, c_n) each [2*num_layers, N, Hp], lengths).
    pack_padded/pad_packed is replaced by in-kernel length masking (padded
    positions of memory_bank are exactly 0, final states taken at each
    sequence's true last step), so no sorting/permutation bookkeeping is needed.
    """
    t_len, n, _ = src_emb.shape
    if lengths is None:
        lengths = jnp.full((n,), t_len, jnp.int32)

    x = src_emb
    h_list, c_list = [], []
    for lp in prepared_layers:
        x, h_fin, c_fin = _bilstm_layer(x, lengths, lp)
        h_list.append(h_fin)
        c_list.append(c_fin)

    h_n = jnp.concatenate(h_list, axis=0)   # [2*num_layers, N, Hp], (fwd, bwd) per layer
    c_n = jnp.concatenate(c_list, axis=0)
    return x, (h_n, c_n), lengths


# --------------------------- demo / smoke test --------------------------------

def _make_raw_lstm_layer(key, in_sz, hp, scale=0.1):
    ks = jax.random.split(key, 8)

    def d(k, s):
        return jax.random.normal(k, s, jnp.float32) * scale

    return {
        "w_ih_f": d(ks[0], (4 * hp, in_sz)),
        "w_hh_f": d(ks[1], (4 * hp, hp)),
        "b_ih_f": d(ks[2], (4 * hp,)),
        "b_hh_f": d(ks[3], (4 * hp,)),
        "w_ih_b": d(ks[4], (4 * hp, in_sz)),
        "w_hh_b": d(ks[5], (4 * hp, hp)),
        "b_ih_b": d(ks[6], (4 * hp,)),
        "b_hh_b": d(ks[7], (4 * hp,)),
    }


if __name__ == "__main__":
    key = jax.random.PRNGKey(0)
    T, B, E = 8, 2, 16
    HIDDEN, NUM_LAYERS = 32, 2          # bidirectional -> per-direction hidden = 16
    HP = HIDDEN // 2

    keys = jax.random.split(key, NUM_LAYERS + 1)
    raw_layers = []
    in_sz = E
    for l in range(NUM_LAYERS):
        raw_layers.append(_make_raw_lstm_layer(keys[l], in_sz, HP))
        in_sz = HIDDEN
    prepared = prepare_lstm_params(raw_layers)

    src_emb = jax.random.normal(keys[-1], (T, B, E), jnp.float32)
    lengths = jnp.array([T, 5], jnp.int32)   # variable-length batch (pack/unpack semantics)

    fwd = jax.jit(rnn_encoder_forward)
    memory_bank, (h_n, c_n), out_len = fwd(prepared, src_emb, lengths)
    memory_bank, h_n, c_n = jax.block_until_ready((memory_bank, h_n, c_n))

    assert memory_bank.shape == (T, B, HIDDEN)
    assert h_n.shape == (2 * NUM_LAYERS, B, HP)
    assert c_n.shape == (2 * NUM_LAYERS, B, HP)
    assert bool(jnp.all(jnp.isfinite(memory_bank)))
    assert bool(jnp.all(jnp.isfinite(h_n))) and bool(jnp.all(jnp.isfinite(c_n)))
    # padded timesteps of the short sequence must be exactly zero (unpack semantics)
    assert bool(jnp.all(memory_bank[5:, 1, :] == 0.0))
    print("KERNEL_OK")
</pallas_src>

<mosaic_0001>
module attributes {stable_mosaic.version = 11 : i64} {
  func.func @_dual_linear_kernel(%arg0: i32, %arg1: memref<16x16xbf16, #tpu.memory_space<vmem>>, %arg2: memref<16x64xbf16, #tpu.memory_space<vmem>>, %arg3: memref<16x64xbf16, #tpu.memory_space<vmem>>, %arg4: memref<1x64xf32, #tpu.memory_space<vmem>>, %arg5: memref<1x64xf32, #tpu.memory_space<vmem>>, %arg6: memref<16x64xf32, #tpu.memory_space<vmem>>, %arg7: memref<16x64xf32, #tpu.memory_space<vmem>>) attributes {dimension_semantics = [#tpu.dimension_semantics<parallel>], iteration_bounds = array<i64: 1>, scalar_prefetch = 0 : i64, scratch_operands = 0 : i64, tpu.core_type = #tpu.core_type<tc>, window_params = [{transform_indices = @transform_0, window_bounds = array<i64: 16, 16>}, {pipeline_mode = #tpu.pipeline_mode<synchronous>, transform_indices = @transform_1, window_bounds = array<i64: 16, 64>}, {pipeline_mode = #tpu.pipeline_mode<synchronous>, transform_indices = @transform_2, window_bounds = array<i64: 16, 64>}, {pipeline_mode = #tpu.pipeline_mode<synchronous>, transform_indices = @transform_3, window_bounds = array<i64: 1, 64>}, {pipeline_mode = #tpu.pipeline_mode<synchronous>, transform_indices = @transform_4, window_bounds = array<i64: 1, 64>}, {transform_indices = @transform_5, window_bounds = array<i64: 16, 64>}, {transform_indices = @transform_6, window_bounds = array<i64: 16, 64>}]} {
    %c0 = arith.constant 0 : index
    %c0_0 = arith.constant 0 : index
    %0 = vector.load %arg1[%c0, %c0_0] : memref<16x16xbf16, #tpu.memory_space<vmem>>, vector<16x16xbf16>
    %c0_1 = arith.constant 0 : index
    %c0_2 = arith.constant 0 : index
    %1 = vector.load %arg2[%c0_1, %c0_2] : memref<16x64xbf16, #tpu.memory_space<vmem>>, vector<16x64xbf16>
    %cst = arith.constant dense<0.000000e+00> : vector<16x64xf32>
    %2 = tpu.matmul %0, %1, %cst {dimension_numbers = #tpu.dot_dimension_numbers<[1], [0], [0], [1], [0, 0, 1, 1], [], []>} : vector<16x16xbf16>, vector<16x64xbf16>, vector<16x64xf32> -> vector<16x64xf32>
    %c0_3 = arith.constant 0 : index
    %c0_4 = arith.constant 0 : index
    %3 = vector.load %arg4[%c0_3, %c0_4] : memref<1x64xf32, #tpu.memory_space<vmem>>, vector<1x64xf32>
    %4 = vector.broadcast %3 : vector<1x64xf32> to vector<16x64xf32>
    %5 = arith.addf %2, %4 : vector<16x64xf32>
    %c0_5 = arith.constant 0 : index
    %c0_6 = arith.constant 0 : index
    %6 = vector.load %arg6[%c0_5, %c0_6] : memref<16x64xf32, #tpu.memory_space<vmem>>, vector<16x64xf32>
    tpu.vector_store %arg6[%c0_5, %c0_6], %5 {strides = array<i32>} : memref<16x64xf32, #tpu.memory_space<vmem>>, vector<16x64xf32>,
    %c0_7 = arith.constant 0 : index
    %c0_8 = arith.constant 0 : index
    %7 = vector.load %arg3[%c0_7, %c0_8] : memref<16x64xbf16, #tpu.memory_space<vmem>>, vector<16x64xbf16>
    %cst_9 = arith.constant dense<0.000000e+00> : vector<16x64xf32>
    %8 = tpu.matmul %0, %7, %cst_9 {dimension_numbers = #tpu.dot_dimension_numbers<[1], [0], [0], [1], [0, 0, 1, 1], [], []>} : vector<16x16xbf16>, vector<16x64xbf16>, vector<16x64xf32> -> vector<16x64xf32>
    %c0_10 = arith.constant 0 : index
    %c0_11 = arith.constant 0 : index
    %9 = vector.load %arg5[%c0_10, %c0_11] : memref<1x64xf32, #tpu.memory_space<vmem>>, vector<1x64xf32>
    %10 = vector.broadcast %9 : vector<1x64xf32> to vector<16x64xf32>
    %11 = arith.addf %8, %10 : vector<16x64xf32>
    %c0_12 = arith.constant 0 : index
    %c0_13 = arith.constant 0 : index
    %12 = vector.load %arg7[%c0_12, %c0_13] : memref<16x64xf32, #tpu.memory_space<vmem>>, vector<16x64xf32>
    tpu.vector_store %arg7[%c0_12, %c0_13], %11 {strides = array<i32>} : memref<16x64xf32, #tpu.memory_space<vmem>>, vector<16x64xf32>,
    return
  }
  func.func @transform_0(%arg0: i32) -> (i32, i32) {
    %c0_i32 = arith.constant 0 : i32
    %c0_i32_0 = arith.constant 0 : i32
    return %arg0, %c0_i32 : i32, i32
  }
  func.func @transform_1(%arg0: i32) -> (i32, i32) {
    %c0_i32 = arith.constant 0 : i32
    %c0_i32_0 = arith.constant 0 : i32
    %c0_i32_1 = arith.constant 0 : i32
    return %c0_i32, %c0_i32_0 : i32, i32
  }
  func.func @transform_2(%arg0: i32) -> (i32, i32) {
    %c0_i32 = arith.constant 0 : i32
    %c0_i32_0 = arith.constant 0 : i32
    %c0_i32_1 = arith.constant 0 : i32
    return %c0_i32, %c0_i32_0 : i32, i32
  }
  func.func @transform_3(%arg0: i32) -> (i32, i32) {
    %c0_i32 = arith.constant 0 : i32
    %c0_i32_0 = arith.constant 0 : i32
    %c0_i32_1 = arith.constant 0 : i32
    return %c0_i32, %c0_i32_0 : i32, i32
  }
  func.func @transform_4(%arg0: i32) -> (i32, i32) {
    %c0_i32 = arith.constant 0 : i32
    %c0_i32_0 = arith.constant 0 : i32
    %c0_i32_1 = arith.constant 0 : i32
    return %c0_i32, %c0_i32_0 : i32, i32
  }
  func.func @transform_5(%arg0: i32) -> (i32, i32) {
    %c0_i32 = arith.constant 0 : i32
    %c0_i32_0 = arith.constant 0 : i32
    return %arg0, %c0_i32 : i32, i32
  }
  func.func @transform_6(%arg0: i32) -> (i32, i32) {
    %c0_i32 = arith.constant 0 : i32
    %c0_i32_0 = arith.constant 0 : i32
    return %arg0, %c0_i32 : i32, i32
  }
}

module attributes {stable_mosaic.version = 11 : i64} {
  func.func @_bilstm_kernel(%arg0: i32, %arg1: memref<2x1xi32, #tpu.memory_space<vmem>>, %arg2: memref<8x2x64xf32, #tpu.memory_space<vmem>>, %arg3: memref<8x2x64xf32, #tpu.memory_space<vmem>>, %arg4: memref<16x64xbf16, #tpu.memory_space<vmem>>, %arg5: memref<16x64xbf16, #tpu.memory_space<vmem>>, %arg6: memref<8x2x16xf32, #tpu.memory_space<vmem>>, %arg7: memref<8x2x16xf32, #tpu.memory_space<vmem>>, %arg8: memref<2x2x16xf32, #tpu.memory_space<vmem>>, %arg9: memref<2x2x16xf32, #tpu.memory_space<vmem>>, %arg10: memref<4x2x16xf32, #tpu.memory_space<vmem>>) attributes {dimension_semantics = [#tpu.dimension_semantics<arbitrary>], iteration_bounds = array<i64: 1>, scalar_prefetch = 0 : i64, scratch_operands = 1 : i64, tpu.core_type = #tpu.core_type<tc>, window_params = [{pipeline_mode = #tpu.pipeline_mode<synchronous>, transform_indices = @transform_0, window_bounds = array<i64: 2, 1>}, {transform_indices = @transform_1, window_bounds = array<i64: 8, 2, 64>}, {transform_indices = @transform_2, window_bounds = array<i64: 8, 2, 64>}, {pipeline_mode = #tpu.pipeline_mode<synchronous>, transform_indices = @transform_3, window_bounds = array<i64: 16, 64>}, {pipeline_mode = #tpu.pipeline_mode<synchronous>, transform_indices = @transform_4, window_bounds = array<i64: 16, 64>}, {transform_indices = @transform_5, window_bounds = array<i64: 8, 2, 16>}, {transform_indices = @transform_6, window_bounds = array<i64: 8, 2, 16>}, {pipeline_mode = #tpu.pipeline_mode<synchronous>, transform_indices = @transform_7, window_bounds = array<i64: 2, 2, 16>}, {pipeline_mode = #tpu.pipeline_mode<synchronous>, transform_indices = @transform_8, window_bounds = array<i64: 2, 2, 16>}]} {
    %c0_i32 = arith.constant 0 : i32
    %0 = arith.cmpi eq, %arg0, %c0_i32 : i32
    %1 = arith.extui %0 : i1 to i32
    %c0_i32_0 = arith.constant 0 : i32
    %2 = arith.cmpi ne, %1, %c0_i32_0 : i32
    scf.if %2 {
      %cst_204 = arith.constant 0.000000e+00 : f32
      %693 = vector.broadcast %cst_204 : f32 to vector<4x2x16xf32>
      %c0_205 = arith.constant 0 : index
      %c0_206 = arith.constant 0 : index
      %c0_207 = arith.constant 0 : index
      %694 = vector.load %arg10[%c0_205, %c0_206, %c0_207] : memref<4x2x16xf32, #tpu.memory_space<vmem>>, vector<4x2x16xf32>
      tpu.vector_store %arg10[%c0_205, %c0_206, %c0_207], %693 {strides = array<i32>} : memref<4x2x16xf32, #tpu.memory_space<vmem>>, vector<4x2x16xf32>,
    } else {
    }
    %c0 = arith.constant 0 : index
    %c0_1 = arith.constant 0 : index
    %3 = vector.load %arg1[%c0, %c0_1] : memref<2x1xi32, #tpu.memory_space<vmem>>, vector<2x1xi32>
    %c8_i32 = arith.constant 8 : i32
    %4 = arith.muli %arg0, %c8_i32 : i32
    %c0_2 = arith.constant 0 : index
    %c0_3 = arith.constant 0 : index
    %c0_4 = arith.constant 0 : index
    %5 = vector.load %arg10[%c0_2, %c0_3, %c0_4] : memref<4x2x16xf32, #tpu.memory_space<vmem>>, vector<1x2x16xf32>
    %6 = vector.shape_cast %5 : vector<1x2x16xf32> to vector<2x16xf32>
    %c1 = arith.constant 1 : index
    %c0_5 = arith.constant 0 : index
    %c0_6 = arith.constant 0 : index
    %7 = vector.load %arg10[%c1, %c0_5, %c0_6] : memref<4x2x16xf32, #tpu.memory_space<vmem>>, vector<1x2x16xf32>
    %8 = vector.shape_cast %7 : vector<1x2x16xf32> to vector<2x16xf32>
    %c2 = arith.constant 2 : index
    %c0_7 = arith.constant 0 : index
    %c0_8 = arith.constant 0 : index
    %9 = vector.load %arg10[%c2, %c0_7, %c0_8] : memref<4x2x16xf32, #tpu.memory_space<vmem>>, vector<1x2x16xf32>
    %10 = vector.shape_cast %9 : vector<1x2x16xf32> to vector<2x16xf32>
    %c3 = arith.constant 3 : index
    %c0_9 = arith.constant 0 : index
    %c0_10 = arith.constant 0 : index
    %11 = vector.load %arg10[%c3, %c0_9, %c0_10] : memref<4x2x16xf32, #tpu.memory_space<vmem>>, vector<1x2x16xf32>
    %12 = vector.shape_cast %11 : vector<1x2x16xf32> to vector<2x16xf32>
    %c0_i32_11 = arith.constant 0 : i32
    %13 = arith.addi %4, %c0_i32_11 : i32
    %c7_i32 = arith.constant 7 : i32
    %14 = arith.subi %c7_i32, %13 : i32
    %15 = arith.index_cast %c0_i32_11 : i32 to index
    %c0_12 = arith.constant 0 : index
    %c0_13 = arith.constant 0 : index
    %16 = vector.load %arg2[%15, %c0_12, %c0_13] : memref<8x2x64xf32, #tpu.memory_space<vmem>>, vector<1x2x64xf32>
    %17 = vector.shape_cast %16 : vector<1x2x64xf32> to vector<2x64xf32>
    %18 = arith.truncf %6 : vector<2x16xf32> to vector<2x16xbf16>
    %c0_14 = arith.constant 0 : index
    %c0_15 = arith.constant 0 : index
    %19 = vector.load %arg4[%c0_14, %c0_15] : memref<16x64xbf16, #tpu.memory_space<vmem>>, vector<16x64xbf16>
    %cst = arith.constant dense<0.000000e+00> : vector<2x64xf32>
    %20 = tpu.matmul %18, %19, %cst {dimension_numbers = #tpu.dot_dimension_numbers<[1], [0], [0], [1], [0, 0, 1, 1], [], []>} : vector<2x16xbf16>, vector<16x64xbf16>, vector<2x64xf32> -> vector<2x64xf32>
    %21 = arith.addf %17, %20 : vector<2x64xf32>
    %c7_i32_16 = arith.constant 7 : i32
    %22 = arith.subi %c7_i32_16, %c0_i32_11 : i32
    %23 = arith.index_cast %22 : i32 to index
    %c0_17 = arith.constant 0 : index
    %c0_18 = arith.constant 0 : index
    %24 = vector.load %arg3[%23, %c0_17, %c0_18] : memref<8x2x64xf32, #tpu.memory_space<vmem>>, vector<1x2x64xf32>
    %25 = vector.shape_cast %24 : vector<1x2x64xf32> to vector<2x64xf32>
    %26 = arith.truncf %10 : vector<2x16xf32> to vector<2x16xbf16>
    %c0_19 = arith.constant 0 : index
    %c0_20 = arith.constant 0 : index
    %27 = vector.load %arg5[%c0_19, %c0_20] : memref<16x64xbf16, #tpu.memory_space<vmem>>, vector<16x64xbf16>
    %cst_21 = arith.constant dense<0.000000e+00> : vector<2x64xf32>
    %28 = tpu.matmul %26, %27, %cst_21 {dimension_numbers = #tpu.dot_dimension_numbers<[1], [0], [0], [1], [0, 0, 1, 1], [], []>} : vector<2x16xbf16>, vector<16x64xbf16>, vector<2x64xf32> -> vector<2x64xf32>
    %29 = arith.addf %25, %28 : vector<2x64xf32>
    %30 = vector.extract_strided_slice %21 {offsets = [0, 0], sizes = [2, 48], strides = [1, 1]} : vector<2x64xf32> to vector<2x48xf32>
    %31 = arith.negf %30 : vector<2x48xf32>
    %32 = math.exp %31 : vector<2x48xf32>
    %cst_22 = arith.constant 1.000000e+00 : f32
    %33 = vector.broadcast %cst_22 : f32 to vector<2x48xf32>
    %34 = arith.addf %33, %32 : vector<2x48xf32>
    %35 = arith.divf %33, %34 : vector<2x48xf32>
    %36 = vector.extract_strided_slice %21 {offsets = [0, 48], sizes = [2, 16], strides = [1, 1]} : vector<2x64xf32> to vector<2x16xf32>
    %37 = math.tanh %36 : vector<2x16xf32>
    %38 = vector.extract_strided_slice %35 {offsets = [0, 0], sizes = [2, 16], strides = [1, 1]} : vector<2x48xf32> to vector<2x16xf32>
    %39 = vector.extract_strided_slice %35 {offsets = [0, 16], sizes = [2, 16], strides = [1, 1]} : vector<2x48xf32> to vector<2x16xf32>
    %40 = vector.extract_strided_slice %35 {offsets = [0, 32], sizes = [2, 16], strides = [1, 1]} : vector<2x48xf32> to vector<2x16xf32>
    %41 = arith.mulf %39, %8 : vector<2x16xf32>
    %42 = arith.mulf %38, %37 : vector<2x16xf32>
    %43 = arith.addf %41, %42 : vector<2x16xf32>
    %44 = math.tanh %43 : vector<2x16xf32>
    %45 = arith.mulf %40, %44 : vector<2x16xf32>
    %46 = vector.extract_strided_slice %29 {offsets = [0, 0], sizes = [2, 48], strides = [1, 1]} : vector<2x64xf32> to vector<2x48xf32>
    %47 = arith.negf %46 : vector<2x48xf32>
    %48 = math.exp %47 : vector<2x48xf32>
    %cst_23 = arith.constant 1.000000e+00 : f32
    %49 = vector.broadcast %cst_23 : f32 to vector<2x48xf32>
    %50 = arith.addf %49, %48 : vector<2x48xf32>
    %51 = arith.divf %49, %50 : vector<2x48xf32>
    %52 = vector.extract_strided_slice %29 {offsets = [0, 48], sizes = [2, 16], strides = [1, 1]} : vector<2x64xf32> to vector<2x16xf32>
    %53 = math.tanh %52 : vector<2x16xf32>
    %54 = vector.extract_strided_slice %51 {offsets = [0, 0], sizes = [2, 16], strides = [1, 1]} : vector<2x48xf32> to vector<2x16xf32>
    %55 = vector.extract_strided_slice %51 {offsets = [0, 16], sizes = [2, 16], strides = [1, 1]} : vector<2x48xf32> to vector<2x16xf32>
    %56 = vector.extract_strided_slice %51 {offsets = [0, 32], sizes = [2, 16], strides = [1, 1]} : vector<2x48xf32> to vector<2x16xf32>
    %57 = arith.mulf %55, %12 : vector<2x16xf32>
    %58 = arith.mulf %54, %53 : vector<2x16xf32>
    %59 = arith.addf %57, %58 : vector<2x16xf32>
    %60 = math.tanh %59 : vector<2x16xf32>
    %61 = arith.mulf %56, %60 : vector<2x16xf32>
    %62 = vector.broadcast %13 : i32 to vector<2x1xi32>
    %63 = arith.cmpi slt, %62, %3 : vector<2x1xi32>
    %64 = vector.broadcast %14 : i32 to vector<2x1xi32>
    %65 = arith.cmpi slt, %64, %3 : vector<2x1xi32>
    %66 = vector.shape_cast %63 : vector<2x1xi1> to vector<2x1xi1>
    %67 = vector.broadcast %66 : vector<2x1xi1> to vector<2x16xi1>
    %68 = arith.select %67, %45, %6 : vector<2x16xi1>, vector<2x16xf32>
    %69 = vector.shape_cast %63 : vector<2x1xi1> to vector<2x1xi1>
    %70 = vector.broadcast %69 : vector<2x1xi1> to vector<2x16xi1>
    %71 = arith.select %70, %43, %8 : vector<2x16xi1>, vector<2x16xf32>
    %72 = vector.shape_cast %65 : vector<2x1xi1> to vector<2x1xi1>
    %73 = vector.broadcast %72 : vector<2x1xi1> to vector<2x16xi1>
    %74 = arith.select %73, %61, %10 : vector<2x16xi1>, vector<2x16xf32>
    %75 = vector.shape_cast %65 : vector<2x1xi1> to vector<2x1xi1>
    %76 = vector.broadcast %75 : vector<2x1xi1> to vector<2x16xi1>
    %77 = arith.select %76, %59, %12 : vector<2x16xi1>, vector<2x16xf32>
    %cst_24 = arith.constant 0.000000e+00 : f32
    %78 = vector.shape_cast %63 : vector<2x1xi1> to vector<2x1xi1>
    %79 = vector.broadcast %78 : vector<2x1xi1> to vector<2x16xi1>
    %80 = vector.broadcast %cst_24 : f32 to vector<2x16xf32>
    %81 = arith.select %79, %68, %80 : vector<2x16xi1>, vector<2x16xf32>
    %82 = arith.index_cast %c0_i32_11 : i32 to index
    %c0_25 = arith.constant 0 : index
    %c0_26 = arith.constant 0 : index
    %83 = vector.load %arg6[%82, %c0_25, %c0_26] : memref<8x2x16xf32, #tpu.memory_space<vmem>>, vector<1x2x16xf32>
    %84 = vector.shape_cast %83 : vector<1x2x16xf32> to vector<2x16xf32>
    %85 = vector.shape_cast %81 : vector<2x16xf32> to vector<1x2x16xf32>
    tpu.vector_store %arg6[%82, %c0_25, %c0_26], %85 {strides = array<i32>} : memref<8x2x16xf32, #tpu.memory_space<vmem>>, vector<1x2x16xf32>,
    %cst_27 = arith.constant 0.000000e+00 : f32
    %86 = vector.shape_cast %65 : vector<2x1xi1> to vector<2x1xi1>
    %87 = vector.broadcast %86 : vector<2x1xi1> to vector<2x16xi1>
    %88 = vector.broadcast %cst_27 : f32 to vector<2x16xf32>
    %89 = arith.select %87, %74, %88 : vector<2x16xi1>, vector<2x16xf32>
    %c7_i32_28 = arith.constant 7 : i32
    %90 = arith.subi %c7_i32_28, %c0_i32_11 : i32
    %91 = arith.index_cast %90 : i32 to index
    %c0_29 = arith.constant 0 : index
    %c0_30 = arith.constant 0 : index
    %92 = vector.load %arg7[%91, %c0_29, %c0_30] : memref<8x2x16xf32, #tpu.memory_space<vmem>>, vector<1x2x16xf32>
    %93 = vector.shape_cast %92 : vector<1x2x16xf32> to vector<2x16xf32>
    %94 = vector.shape_cast %89 : vector<2x16xf32> to vector<1x2x16xf32>
    tpu.vector_store %arg7[%91, %c0_29, %c0_30], %94 {strides = array<i32>} : memref<8x2x16xf32, #tpu.memory_space<vmem>>, vector<1x2x16xf32>,
    %c1_i32 = arith.constant 1 : i32
    %95 = arith.addi %4, %c1_i32 : i32
    %c7_i32_31 = arith.constant 7 : i32
    %96 = arith.subi %c7_i32_31, %95 : i32
    %97 = arith.index_cast %c1_i32 : i32 to index
    %c0_32 = arith.constant 0 : index
    %c0_33 = arith.constant 0 : index
    %98 = vector.load %arg2[%97, %c0_32, %c0_33] : memref<8x2x64xf32, #tpu.memory_space<vmem>>, vector<1x2x64xf32>
    %99 = vector.shape_cast %98 : vector<1x2x64xf32> to vector<2x64xf32>
    %100 = arith.truncf %68 : vector<2x16xf32> to vector<2x16xbf16>
    %c0_34 = arith.constant 0 : index
    %c0_35 = arith.constant 0 : index
    %101 = vector.load %arg4[%c0_34, %c0_35] : memref<16x64xbf16, #tpu.memory_space<vmem>>, vector<16x64xbf16>
    %cst_36 = arith.constant dense<0.000000e+00> : vector<2x64xf32>
    %102 = tpu.matmul %100, %101, %cst_36 {dimension_numbers = #tpu.dot_dimension_numbers<[1], [0], [0], [1], [0, 0, 1, 1], [], []>} : vector<2x16xbf16>, vector<16x64xbf16>, vector<2x64xf32> -> vector<2x64xf32>
    %103 = arith.addf %99, %102 : vector<2x64xf32>
    %c7_i32_37 = arith.constant 7 : i32
    %104 = arith.subi %c7_i32_37, %c1_i32 : i32
    %105 = arith.index_cast %104 : i32 to index
    %c0_38 = arith.constant 0 : index
    %c0_39 = arith.constant 0 : index
    %106 = vector.load %arg3[%105, %c0_38, %c0_39] : memref<8x2x64xf32, #tpu.memory_space<vmem>>, vector<1x2x64xf32>
    %107 = vector.shape_cast %106 : vector<1x2x64xf32> to vector<2x64xf32>
    %108 = arith.truncf %74 : vector<2x16xf32> to vector<2x16xbf16>
    %c0_40 = arith.constant 0 : index
    %c0_41 = arith.constant 0 : index
    %109 = vector.load %arg5[%c0_40, %c0_41] : memref<16x64xbf16, #tpu.memory_space<vmem>>, vector<16x64xbf16>
    %cst_42 = arith.constant dense<0.000000e+00> : vector<2x64xf32>
    %110 = tpu.matmul %108, %109, %cst_42 {dimension_numbers = #tpu.dot_dimension_numbers<[1], [0], [0], [1], [0, 0, 1, 1], [], []>} : vector<2x16xbf16>, vector<16x64xbf16>, vector<2x64xf32> -> vector<2x64xf32>
    %111 = arith.addf %107, %110 : vector<2x64xf32>
    %112 = vector.extract_strided_slice %103 {offsets = [0, 0], sizes = [2, 48], strides = [1, 1]} : vector<2x64xf32> to vector<2x48xf32>
    %113 = arith.negf %112 : vector<2x48xf32>
    %114 = math.exp %113 : vector<2x48xf32>
    %cst_43 = arith.constant 1.000000e+00 : f32
    %115 = vector.broadcast %cst_43 : f32 to vector<2x48xf32>
    %116 = arith.addf %115, %114 : vector<2x48xf32>
    %117 = arith.divf %115, %116 : vector<2x48xf32>
    %118 = vector.extract_strided_slice %103 {offsets = [0, 48], sizes = [2, 16], strides = [1, 1]} : vector<2x64xf32> to vector<2x16xf32>
    %119 = math.tanh %118 : vector<2x16xf32>
    %120 = vector.extract_strided_slice %117 {offsets = [0, 0], sizes = [2, 16], strides = [1, 1]} : vector<2x48xf32> to vector<2x16xf32>
    %121 = vector.extract_strided_slice %117 {offsets = [0, 16], sizes = [2, 16], strides = [1, 1]} : vector<2x48xf32> to vector<2x16xf32>
    %122 = vector.extract_strided_slice %117 {offsets = [0, 32], sizes = [2, 16], strides = [1, 1]} : vector<2x48xf32> to vector<2x16xf32>
    %123 = arith.mulf %121, %71 : vector<2x16xf32>
    %124 = arith.mulf %120, %119 : vector<2x16xf32>
    %125 = arith.addf %123, %124 : vector<2x16xf32>
    %126 = math.tanh %125 : vector<2x16xf32>
    %127 = arith.mulf %122, %126 : vector<2x16xf32>
    %128 = vector.extract_strided_slice %111 {offsets = [0, 0], sizes = [2, 48], strides = [1, 1]} : vector<2x64xf32> to vector<2x48xf32>
    %129 = arith.negf %128 : vector<2x48xf32>
    %130 = math.exp %129 : vector<2x48xf32>
    %cst_44 = arith.constant 1.000000e+00 : f32
    %131 = vector.broadcast %cst_44 : f32 to vector<2x48xf32>
    %132 = arith.addf %131, %130 : vector<2x48xf32>
    %133 = arith.divf %131, %132 : vector<2x48xf32>
    %134 = vector.extract_strided_slice %111 {offsets = [0, 48], sizes = [2, 16], strides = [1, 1]} : vector<2x64xf32> to vector<2x16xf32>
    %135 = math.tanh %134 : vector<2x16xf32>
    %136 = vector.extract_strided_slice %133 {offsets = [0, 0], sizes = [2, 16], strides = [1, 1]} : vector<2x48xf32> to vector<2x16xf32>
    %137 = vector.extract_strided_slice %133 {offsets = [0, 16], sizes = [2, 16], strides = [1, 1]} : vector<2x48xf32> to vector<2x16xf32>
    %138 = vector.extract_strided_slice %133 {offsets = [0, 32], sizes = [2, 16], strides = [1, 1]} : vector<2x48xf32> to vector<2x16xf32>
    %139 = arith.mulf %137, %77 : vector<2x16xf32>
    %140 = arith.mulf %136, %135 : vector<2x16xf32>
    %141 = arith.addf %139, %140 : vector<2x16xf32>
    %142 = math.tanh %141 : vector<2x16xf32>
    %143 = arith.mulf %138, %142 : vector<2x16xf32>
    %144 = vector.broadcast %95 : i32 to vector<2x1xi32>
    %145 = arith.cmpi slt, %144, %3 : vector<2x1xi32>
    %146 = vector.broadcast %96 : i32 to vector<2x1xi32>
    %147 = arith.cmpi slt, %146, %3 : vector<2x1xi32>
    %148 = vector.shape_cast %145 : vector<2x1xi1> to vector<2x1xi1>
    %149 = vector.broadcast %148 : vector<2x1xi1> to vector<2x16xi1>
    %150 = arith.select %149, %127, %68 : vector<2x16xi1>, vector<2x16xf32>
    %151 = vector.shape_cast %145 : vector<2x1xi1> to vector<2x1xi1>
    %152 = vector.broadcast %151 : vector<2x1xi1> to vector<2x16xi1>
    %153 = arith.select %152, %125, %71 : vector<2x16xi1>, vector<2x16xf32>
    %154 = vector.shape_cast %147 : vector<2x1xi1> to vector<2x1xi1>
    %155 = vector.broadcast %154 : vector<2x1xi1> to vector<2x16xi1>
    %156 = arith.select %155, %143, %74 : vector<2x16xi1>, vector<2x16xf32>
    %157 = vector.shape_cast %147 : vector<2x1xi1> to vector<2x1xi1>
    %158 = vector.broadcast %157 : vector<2x1xi1> to vector<2x16xi1>
    %159 = arith.select %158, %141, %77 : vector<2x16xi1>, vector<2x16xf32>
    %cst_45 = arith.constant 0.000000e+00 : f32
    %160 = vector.shape_cast %145 : vector<2x1xi1> to vector<2x1xi1>
    %161 = vector.broadcast %160 : vector<2x1xi1> to vector<2x16xi1>
    %162 = vector.broadcast %cst_45 : f32 to vector<2x16xf32>
    %163 = arith.select %161, %150, %162 : vector<2x16xi1>, vector<2x16xf32>
    %164 = arith.index_cast %c1_i32 : i32 to index
    %c0_46 = arith.constant 0 : index
    %c0_47 = arith.constant 0 : index
    %165 = vector.load %arg6[%164, %c0_46, %c0_47] : memref<8x2x16xf32, #tpu.memory_space<vmem>>, vector<1x2x16xf32>
    %166 = vector.shape_cast %165 : vector<1x2x16xf32> to vector<2x16xf32>
    %167 = vector.shape_cast %163 : vector<2x16xf32> to vector<1x2x16xf32>
    tpu.vector_store %arg6[%164, %c0_46, %c0_47], %167 {strides = array<i32>} : memref<8x2x16xf32, #tpu.memory_space<vmem>>, vector<1x2x16xf32>,
    %cst_48 = arith.constant 0.000000e+00 : f32
    %168 = vector.shape_cast %147 : vector<2x1xi1> to vector<2x1xi1>
    %169 = vector.broadcast %168 : vector<2x1xi1> to vector<2x16xi1>
    %170 = vector.broadcast %cst_48 : f32 to vector<2x16xf32>
    %171 = arith.select %169, %156, %170 : vector<2x16xi1>, vector<2x16xf32>
    %c7_i32_49 = arith.constant 7 : i32
    %172 = arith.subi %c7_i32_49, %c1_i32 : i32
    %173 = arith.index_cast %172 : i32 to index
    %c0_50 = arith.constant 0 : index
    %c0_51 = arith.constant 0 : index
    %174 = vector.load %arg7[%173, %c0_50, %c0_51] : memref<8x2x16xf32, #tpu.memory_space<vmem>>, vector<1x2x16xf32>
    %175 = vector.shape_cast %174 : vector<1x2x16xf32> to vector<2x16xf32>
    %176 = vector.shape_cast %171 : vector<2x16xf32> to vector<1x2x16xf32>
    tpu.vector_store %arg7[%173, %c0_50, %c0_51], %176 {strides = array<i32>} : memref<8x2x16xf32, #tpu.memory_space<vmem>>, vector<1x2x16xf32>,
    %c2_i32 = arith.constant 2 : i32
    %177 = arith.addi %4, %c2_i32 : i32
    %c7_i32_52 = arith.constant 7 : i32
    %178 = arith.subi %c7_i32_52, %177 : i32
    %179 = arith.index_cast %c2_i32 : i32 to index
    %c0_53 = arith.constant 0 : index
    %c0_54 = arith.constant 0 : index
    %180 = vector.load %arg2[%179, %c0_53, %c0_54] : memref<8x2x64xf32, #tpu.memory_space<vmem>>, vector<1x2x64xf32>
    %181 = vector.shape_cast %180 : vector<1x2x64xf32> to vector<2x64xf32>
    %182 = arith.truncf %150 : vector<2x16xf32> to vector<2x16xbf16>
    %c0_55 = arith.constant 0 : index
    %c0_56 = arith.constant 0 : index
    %183 = vector.load %arg4[%c0_55, %c0_56] : memref<16x64xbf16, #tpu.memory_space<vmem>>, vector<16x64xbf16>
    %cst_57 = arith.constant dense<0.000000e+00> : vector<2x64xf32>
    %184 = tpu.matmul %182, %183, %cst_57 {dimension_numbers = #tpu.dot_dimension_numbers<[1], [0], [0], [1], [0, 0, 1, 1], [], []>} : vector<2x16xbf16>, vector<16x64xbf16>, vector<2x64xf32> -> vector<2x64xf32>
    %185 = arith.addf %181, %184 : vector<2x64xf32>
    %c7_i32_58 = arith.constant 7 : i32
    %186 = arith.subi %c7_i32_58, %c2_i32 : i32
    %187 = arith.index_cast %186 : i32 to index
    %c0_59 = arith.constant 0 : index
    %c0_60 = arith.constant 0 : index
    %188 = vector.load %arg3[%187, %c0_59, %c0_60] : memref<8x2x64xf32, #tpu.memory_space<vmem>>, vector<1x2x64xf32>
    %189 = vector.shape_cast %188 : vector<1x2x64xf32> to vector<2x64xf32>
    %190 = arith.truncf %156 : vector<2x16xf32> to vector<2x16xbf16>
    %c0_61 = arith.constant 0 : index
    %c0_62 = arith.constant 0 : index
    %191 = vector.load %arg5[%c0_61, %c0_62] : memref<16x64xbf16, #tpu.memory_space<vmem>>, vector<16x64xbf16>
    %cst_63 = arith.constant dense<0.000000e+00> : vector<2x64xf32>
    %192 = tpu.matmul %190, %191, %cst_63 {dimension_numbers = #tpu.dot_dimension_numbers<[1], [0], [0], [1], [0, 0, 1, 1], [], []>} : vector<2x16xbf16>, vector<16x64xbf16>, vector<2x64xf32> -> vector<2x64xf32>
    %193 = arith.addf %189, %192 : vector<2x64xf32>
    %194 = vector.extract_strided_slice %185 {offsets = [0, 0], sizes = [2, 48], strides = [1, 1]} : vector<2x64xf32> to vector<2x48xf32>
    %195 = arith.negf %194 : vector<2x48xf32>
    %196 = math.exp %195 : vector<2x48xf32>
    %cst_64 = arith.constant 1.000000e+00 : f32
    %197 = vector.broadcast %cst_64 : f32 to vector<2x48xf32>
    %198 = arith.addf %197, %196 : vector<2x48xf32>
    %199 = arith.divf %197, %198 : vector<2x48xf32>
    %200 = vector.extract_strided_slice %185 {offsets = [0, 48], sizes = [2, 16], strides = [1, 1]} : vector<2x64xf32> to vector<2x16xf32>
    %201 = math.tanh %200 : vector<2x16xf32>
    %202 = vector.extract_strided_slice %199 {offsets = [0, 0], sizes = [2, 16], strides = [1, 1]} : vector<2x48xf32> to vector<2x16xf32>
    %203 = vector.extract_strided_slice %199 {offsets = [0, 16], sizes = [2, 16], strides = [1, 1]} : vector<2x48xf32> to vector<2x16xf32>
    %204 = vector.extract_strided_slice %199 {offsets = [0, 32], sizes = [2, 16], strides = [1, 1]} : vector<2x48xf32> to vector<2x16xf32>
    %205 = arith.mulf %203, %153 : vector<2x16xf32>
    %206 = arith.mulf %202, %201 : vector<2x16xf32>
    %207 = arith.addf %205, %206 : vector<2x16xf32>
    %208 = math.tanh %207 : vector<2x16xf32>
    %209 = arith.mulf %204, %208 : vector<2x16xf32>
    %210 = vector.extract_strided_slice %193 {offsets = [0, 0], sizes = [2, 48], strides = [1, 1]} : vector<2x64xf32> to vector<2x48xf32>
    %211 = arith.negf %210 : vector<2x48xf32>
    %212 = math.exp %211 : vector<2x48xf32>
    %cst_65 = arith.constant 1.000000e+00 : f32
    %213 = vector.broadcast %cst_65 : f32 to vector<2x48xf32>
    %214 = arith.addf %213, %212 : vector<2x48xf32>
    %215 = arith.divf %213, %214 : vector<2x48xf32>
    %216 = vector.extract_strided_slice %193 {offsets = [0, 48], sizes = [2, 16], strides = [1, 1]} : vector<2x64xf32> to vector<2x16xf32>
    %217 = math.tanh %216 : vector<2x16xf32>
    %218 = vector.extract_strided_slice %215 {offsets = [0, 0], sizes = [2, 16], strides = [1, 1]} : vector<2x48xf32> to vector<2x16xf32>
    %219 = vector.extract_strided_slice %215 {offsets = [0, 16], sizes = [2, 16], strides = [1, 1]} : vector<2x48xf32> to vector<2x16xf32>
    %220 = vector.extract_strided_slice %215 {offsets = [0, 32], sizes = [2, 16], strides = [1, 1]} : vector<2x48xf32> to vector<2x16xf32>
    %221 = arith.mulf %219, %159 : vector<2x16xf32>
    %222 = arith.mulf %218, %217 : vector<2x16xf32>
    %223 = arith.addf %221, %222 : vector<2x16xf32>
    %224 = math.tanh %223 : vector<2x16xf32>
    %225 = arith.mulf %220, %224 : vector<2x16xf32>
    %226 = vector.broadcast %177 : i32 to vector<2x1xi32>
    %227 = arith.cmpi slt, %226, %3 : vector<2x1xi32>
    %228 = vector.broadcast %178 : i32 to vector<2x1xi32>
    %229 = arith.cmpi slt, %228, %3 : vector<2x1xi32>
    %230 = vector.shape_cast %227 : vector<2x1xi1> to vector<2x1xi1>
    %231 = vector.broadcast %230 : vector<2x1xi1> to vector<2x16xi1>
    %232 = arith.select %231, %209, %150 : vector<2x16xi1>, vector<2x16xf32>
    %233 = vector.shape_cast %227 : vector<2x1xi1> to vector<2x1xi1>
    %234 = vector.broadcast %233 : vector<2x1xi1> to vector<2x16xi1>
    %235 = arith.select %234, %207, %153 : vector<2x16xi1>, vector<2x16xf32>
    %236 = vector.shape_cast %229 : vector<2x1xi1> to vector<2x1xi1>
    %237 = vector.broadcast %236 : vector<2x1xi1> to vector<2x16xi1>
    %238 = arith.select %237, %225, %156 : vector<2x16xi1>, vector<2x16xf32>
    %239 = vector.shape_cast %229 : vector<2x1xi1> to vector<2x1xi1>
    %240 = vector.broadcast %239 : vector<2x1xi1> to vector<2x16xi1>
    %241 = arith.select %240, %223, %159 : vector<2x16xi1>, vector<2x16xf32>
    %cst_66 = arith.constant 0.000000e+00 : f32
    %242 = vector.shape_cast %227 : vector<2x1xi1> to vector<2x1xi1>
    %243 = vector.broadcast %242 : vector<2x1xi1> to vector<2x16xi1>
    %244 = vector.broadcast %cst_66 : f32 to vector<2x16xf32>
    %245 = arith.select %243, %232, %244 : vector<2x16xi1>, vector<2x16xf32>
    %246 = arith.index_cast %c2_i32 : i32 to index
    %c0_67 = arith.constant 0 : index
    %c0_68 = arith.constant 0 : index
    %247 = vector.load %arg6[%246, %c0_67, %c0_68] : memref<8x2x16xf32, #tpu.memory_space<vmem>>, vector<1x2x16xf32>
    %248 = vector.shape_cast %247 : vector<1x2x16xf32> to vector<2x16xf32>
    %249 = vector.shape_cast %245 : vector<2x16xf32> to vector<1x2x16xf32>
    tpu.vector_store %arg6[%246, %c0_67, %c0_68], %249 {strides = array<i32>} : memref<8x2x16xf32, #tpu.memory_space<vmem>>, vector<1x2x16xf32>,
    %cst_69 = arith.constant 0.000000e+00 : f32
    %250 = vector.shape_cast %229 : vector<2x1xi1> to vector<2x1xi1>
    %251 = vector.broadcast %250 : vector<2x1xi1> to vector<2x16xi1>
    %252 = vector.broadcast %cst_69 : f32 to vector<2x16xf32>
    %253 = arith.select %251, %238, %252 : vector<2x16xi1>, vector<2x16xf32>
    %c7_i32_70 = arith.constant 7 : i32
    %254 = arith.subi %c7_i32_70, %c2_i32 : i32
    %255 = arith.index_cast %254 : i32 to index
    %c0_71 = arith.constant 0 : index
    %c0_72 = arith.constant 0 : index
    %256 = vector.load %arg7[%255, %c0_71, %c0_72] : memref<8x2x16xf32, #tpu.memory_space<vmem>>, vector<1x2x16xf32>
    %257 = vector.shape_cast %256 : vector<1x2x16xf32> to vector<2x16xf32>
    %258 = vector.shape_cast %253 : vector<2x16xf32> to vector<1x2x16xf32>
    tpu.vector_store %arg7[%255, %c0_71, %c0_72], %258 {strides = array<i32>} : memref<8x2x16xf32, #tpu.memory_space<vmem>>, vector<1x2x16xf32>,
    %c3_i32 = arith.constant 3 : i32
    %259 = arith.addi %4, %c3_i32 : i32
    %c7_i32_73 = arith.constant 7 : i32
    %260 = arith.subi %c7_i32_73, %259 : i32
    %261 = arith.index_cast %c3_i32 : i32 to index
    %c0_74 = arith.constant 0 : index
    %c0_75 = arith.constant 0 : index
    %262 = vector.load %arg2[%261, %c0_74, %c0_75] : memref<8x2x64xf32, #tpu.memory_space<vmem>>, vector<1x2x64xf32>
    %263 = vector.shape_cast %262 : vector<1x2x64xf32> to vector<2x64xf32>
    %264 = arith.truncf %232 : vector<2x16xf32> to vector<2x16xbf16>
    %c0_76 = arith.constant 0 : index
    %c0_77 = arith.constant 0 : index
    %265 = vector.load %arg4[%c0_76, %c0_77] : memref<16x64xbf16, #tpu.memory_space<vmem>>, vector<16x64xbf16>
    %cst_78 = arith.constant dense<0.000000e+00> : vector<2x64xf32>
    %266 = tpu.matmul %264, %265, %cst_78 {dimension_numbers = #tpu.dot_dimension_numbers<[1], [0], [0], [1], [0, 0, 1, 1], [], []>} : vector<2x16xbf16>, vector<16x64xbf16>, vector<2x64xf32> -> vector<2x64xf32>
    %267 = arith.addf %263, %266 : vector<2x64xf32>
    %c7_i32_79 = arith.constant 7 : i32
    %268 = arith.subi %c7_i32_79, %c3_i32 : i32
    %269 = arith.index_cast %268 : i32 to index
    %c0_80 = arith.constant 0 : index
    %c0_81 = arith.constant 0 : index
    %270 = vector.load %arg3[%269, %c0_80, %c0_81] : memref<8x2x64xf32, #tpu.memory_space<vmem>>, vector<1x2x64xf32>
    %271 = vector.shape_cast %270 : vector<1x2x64xf32> to vector<2x64xf32>
    %272 = arith.truncf %238 : vector<2x16xf32> to vector<2x16xbf16>
    %c0_82 = arith.constant 0 : index
    %c0_83 = arith.constant 0 : index
    %273 = vector.load %arg5[%c0_82, %c0_83] : memref<16x64xbf16, #tpu.memory_space<vmem>>, vector<16x64xbf16>
    %cst_84 = arith.constant dense<0.000000e+00> : vector<2x64xf32>
    %274 = tpu.matmul %272, %273, %cst_84 {dimension_numbers = #tpu.dot_dimension_numbers<[1], [0], [0], [1], [0, 0, 1, 1], [], []>} : vector<2x16xbf16>, vector<16x64xbf16>, vector<2x64xf32> -> vector<2x64xf32>
    %275 = arith.addf %271, %274 : vector<2x64xf32>
    %276 = vector.extract_strided_slice %267 {offsets = [0, 0], sizes = [2, 48], strides = [1, 1]} : vector<2x64xf32> to vector<2x48xf32>
    %277 = arith.negf %276 : vector<2x48xf32>
    %278 = math.exp %277 : vector<2x48xf32>
    %cst_85 = arith.constant 1.000000e+00 : f32
    %279 = vector.broadcast %cst_85 : f32 to vector<2x48xf32>
    %280 = arith.addf %279, %278 : vector<2x48xf32>
    %281 = arith.divf %279, %280 : vector<2x48xf32>
    %282 = vector.extract_strided_slice %267 {offsets = [0, 48], sizes = [2, 16], strides = [1, 1]} : vector<2x64xf32> to vector<2x16xf32>
    %283 = math.tanh %282 : vector<2x16xf32>
    %284 = vector.extract_strided_slice %281 {offsets = [0, 0], sizes = [2, 16], strides = [1, 1]} : vector<2x48xf32> to vector<2x16xf32>
    %285 = vector.extract_strided_slice %281 {offsets = [0, 16], sizes = [2, 16], strides = [1, 1]} : vector<2x48xf32> to vector<2x16xf32>
    %286 = vector.extract_strided_slice %281 {offsets = [0, 32], sizes = [2, 16], strides = [1, 1]} : vector<2x48xf32> to vector<2x16xf32>
    %287 = arith.mulf %285, %235 : vector<2x16xf32>
    %288 = arith.mulf %284, %283 : vector<2x16xf32>
    %289 = arith.addf %287, %288 : vector<2x16xf32>
    %290 = math.tanh %289 : vector<2x16xf32>
    %291 = arith.mulf %286, %290 : vector<2x16xf32>
    %292 = vector.extract_strided_slice %275 {offsets = [0, 0], sizes = [2, 48], strides = [1, 1]} : vector<2x64xf32> to vector<2x48xf32>
    %293 = arith.negf %292 : vector<2x48xf32>
    %294 = math.exp %293 : vector<2x48xf32>
    %cst_86 = arith.constant 1.000000e+00 : f32
    %295 = vector.broadcast %cst_86 : f32 to vector<2x48xf32>
    %296 = arith.addf %295, %294 : vector<2x48xf32>
    %297 = arith.divf %295, %296 : vector<2x48xf32>
    %298 = vector.extract_strided_slice %275 {offsets = [0, 48], sizes = [2, 16], strides = [1, 1]} : vector<2x64xf32> to vector<2x16xf32>
    %299 = math.tanh %298 : vector<2x16xf32>
    %300 = vector.extract_strided_slice %297 {offsets = [0, 0], sizes = [2, 16], strides = [1, 1]} : vector<2x48xf32> to vector<2x16xf32>
    %301 = vector.extract_strided_slice %297 {offsets = [0, 16], sizes = [2, 16], strides = [1, 1]} : vector<2x48xf32> to vector<2x16xf32>
    %302 = vector.extract_strided_slice %297 {offsets = [0, 32], sizes = [2, 16], strides = [1, 1]} : vector<2x48xf32> to vector<2x16xf32>
    %303 = arith.mulf %301, %241 : vector<2x16xf32>
    %304 = arith.mulf %300, %299 : vector<2x16xf32>
    %305 = arith.addf %303, %304 : vector<2x16xf32>
    %306 = math.tanh %305 : vector<2x16xf32>
    %307 = arith.mulf %302, %306 : vector<2x16xf32>
    %308 = vector.broadcast %259 : i32 to vector<2x1xi32>
    %309 = arith.cmpi slt, %308, %3 : vector<2x1xi32>
    %310 = vector.broadcast %260 : i32 to vector<2x1xi32>
    %311 = arith.cmpi slt, %310, %3 : vector<2x1xi32>
    %312 = vector.shape_cast %309 : vector<2x1xi1> to vector<2x1xi1>
    %313 = vector.broadcast %312 : vector<2x1xi1> to vector<2x16xi1>
    %314 = arith.select %313, %291, %232 : vector<2x16xi1>, vector<2x16xf32>
    %315 = vector.shape_cast %309 : vector<2x1xi1> to vector<2x1xi1>
    %316 = vector.broadcast %315 : vector<2x1xi1> to vector<2x16xi1>
    %317 = arith.select %316, %289, %235 : vector<2x16xi1>, vector<2x16xf32>
    %318 = vector.shape_cast %311 : vector<2x1xi1> to vector<2x1xi1>
    %319 = vector.broadcast %318 : vector<2x1xi1> to vector<2x16xi1>
    %320 = arith.select %319, %307, %238 : vector<2x16xi1>, vector<2x16xf32>
    %321 = vector.shape_cast %311 : vector<2x1xi1> to vector<2x1xi1>
    %322 = vector.broadcast %321 : vector<2x1xi1> to vector<2x16xi1>
    %323 = arith.select %322, %305, %241 : vector<2x16xi1>, vector<2x16xf32>
    %cst_87 = arith.constant 0.000000e+00 : f32
    %324 = vector.shape_cast %309 : vector<2x1xi1> to vector<2x1xi1>
    %325 = vector.broadcast %324 : vector<2x1xi1> to vector<2x16xi1>
    %326 = vector.broadcast %cst_87 : f32 to vector<2x16xf32>
    %327 = arith.select %325, %314, %326 : vector<2x16xi1>, vector<2x16xf32>
    %328 = arith.index_cast %c3_i32 : i32 to index
    %c0_88 = arith.constant 0 : index
    %c0_89 = arith.constant 0 : index
    %329 = vector.load %arg6[%328, %c0_88, %c0_89] : memref<8x2x16xf32, #tpu.memory_space<vmem>>, vector<1x2x16xf32>
    %330 = vector.shape_cast %329 : vector<1x2x16xf32> to vector<2x16xf32>
    %331 = vector.shape_cast %327 : vector<2x16xf32> to vector<1x2x16xf32>
    tpu.vector_store %arg6[%328, %c0_88, %c0_89], %331 {strides = array<i32>} : memref<8x2x16xf32, #tpu.memory_space<vmem>>, vector<1x2x16xf32>,
    %cst_90 = arith.constant 0.000000e+00 : f32
    %332 = vector.shape_cast %311 : vector<2x1xi1> to vector<2x1xi1>
    %333 = vector.broadcast %332 : vector<2x1xi1> to vector<2x16xi1>
    %334 = vector.broadcast %cst_90 : f32 to vector<2x16xf32>
    %335 = arith.select %333, %320, %334 : vector<2x16xi1>, vector<2x16xf32>
    %c7_i32_91 = arith.constant 7 : i32
    %336 = arith.subi %c7_i32_91, %c3_i32 : i32
    %337 = arith.index_cast %336 : i32 to index
    %c0_92 = arith.constant 0 : index
    %c0_93 = arith.constant 0 : index
    %338 = vector.load %arg7[%337, %c0_92, %c0_93] : memref<8x2x16xf32, #tpu.memory_space<vmem>>, vector<1x2x16xf32>
    %339 = vector.shape_cast %338 : vector<1x2x16xf32> to vector<2x16xf32>
    %340 = vector.shape_cast %335 : vector<2x16xf32> to vector<1x2x16xf32>
    tpu.vector_store %arg7[%337, %c0_92, %c0_93], %340 {strides = array<i32>} : memref<8x2x16xf32, #tpu.memory_space<vmem>>, vector<1x2x16xf32>,
    %c4_i32 = arith.constant 4 : i32
    %341 = arith.addi %4, %c4_i32 : i32
    %c7_i32_94 = arith.constant 7 : i32
    %342 = arith.subi %c7_i32_94, %341 : i32
    %343 = arith.index_cast %c4_i32 : i32 to index
    %c0_95 = arith.constant 0 : index
    %c0_96 = arith.constant 0 : index
    %344 = vector.load %arg2[%343, %c0_95, %c0_96] : memref<8x2x64xf32, #tpu.memory_space<vmem>>, vector<1x2x64xf32>
    %345 = vector.shape_cast %344 : vector<1x2x64xf32> to vector<2x64xf32>
    %346 = arith.truncf %314 : vector<2x16xf32> to vector<2x16xbf16>
    %c0_97 = arith.constant 0 : index
    %c0_98 = arith.constant 0 : index
    %347 = vector.load %arg4[%c0_97, %c0_98] : memref<16x64xbf16, #tpu.memory_space<vmem>>, vector<16x64xbf16>
    %cst_99 = arith.constant dense<0.000000e+00> : vector<2x64xf32>
    %348 = tpu.matmul %346, %347, %cst_99 {dimension_numbers = #tpu.dot_dimension_numbers<[1], [0], [0], [1], [0, 0, 1, 1], [], []>} : vector<2x16xbf16>, vector<16x64xbf16>, vector<2x64xf32> -> vector<2x64xf32>
    %349 = arith.addf %345, %348 : vector<2x64xf32>
    %c7_i32_100 = arith.constant 7 : i32
    %350 = arith.subi %c7_i32_100, %c4_i32 : i32
    %351 = arith.index_cast %350 : i32 to index
    %c0_101 = arith.constant 0 : index
    %c0_102 = arith.constant 0 : index
    %352 = vector.load %arg3[%351, %c0_101, %c0_102] : memref<8x2x64xf32, #tpu.memory_space<vmem>>, vector<1x2x64xf32>
    %353 = vector.shape_cast %352 : vector<1x2x64xf32> to vector<2x64xf32>
    %354 = arith.truncf %320 : vector<2x16xf32> to vector<2x16xbf16>
    %c0_103 = arith.constant 0 : index
    %c0_104 = arith.constant 0 : index
    %355 = vector.load %arg5[%c0_103, %c0_104] : memref<16x64xbf16, #tpu.memory_space<vmem>>, vector<16x64xbf16>
    %cst_105 = arith.constant dense<0.000000e+00> : vector<2x64xf32>
    %356 = tpu.matmul %354, %355, %cst_105 {dimension_numbers = #tpu.dot_dimension_numbers<[1], [0], [0], [1], [0, 0, 1, 1], [], []>} : vector<2x16xbf16>, vector<16x64xbf16>, vector<2x64xf32> -> vector<2x64xf32>
    %357 = arith.addf %353, %356 : vector<2x64xf32>
    %358 = vector.extract_strided_slice %349 {offsets = [0, 0], sizes = [2, 48], strides = [1, 1]} : vector<2x64xf32> to vector<2x48xf32>
    %359 = arith.negf %358 : vector<2x48xf32>
    %360 = math.exp %359 : vector<2x48xf32>
    %cst_106 = arith.constant 1.000000e+00 : f32
    %361 = vector.broadcast %cst_106 : f32 to vector<2x48xf32>
    %362 = arith.addf %361, %360 : vector<2x48xf32>
    %363 = arith.divf %361, %362 : vector<2x48xf32>
    %364 = vector.extract_strided_slice %349 {offsets = [0, 48], sizes = [2, 16], strides = [1, 1]} : vector<2x64xf32> to vector<2x16xf32>
    %365 = math.tanh %364 : vector<2x16xf32>
    %366 = vector.extract_strided_slice %363 {offsets = [0, 0], sizes = [2, 16], strides = [1, 1]} : vector<2x48xf32> to vector<2x16xf32>
    %367 = vector.extract_strided_slice %363 {offsets = [0, 16], sizes = [2, 16], strides = [1, 1]} : vector<2x48xf32> to vector<2x16xf32>
    %368 = vector.extract_strided_slice %363 {offsets = [0, 32], sizes = [2, 16], strides = [1, 1]} : vector<2x48xf32> to vector<2x16xf32>
    %369 = arith.mulf %367, %317 : vector<2x16xf32>
    %370 = arith.mulf %366, %365 : vector<2x16xf32>
    %371 = arith.addf %369, %370 : vector<2x16xf32>
    %372 = math.tanh %371 : vector<2x16xf32>
    %373 = arith.mulf %368, %372 : vector<2x16xf32>
    %374 = vector.extract_strided_slice %357 {offsets = [0, 0], sizes = [2, 48], strides = [1, 1]} : vector<2x64xf32> to vector<2x48xf32>
    %375 = arith.negf %374 : vector<2x48xf32>
    %376 = math.exp %375 : vector<2x48xf32>
    %cst_107 = arith.constant 1.000000e+00 : f32
    %377 = vector.broadcast %cst_107 : f32 to vector<2x48xf32>
    %378 = arith.addf %377, %376 : vector<2x48xf32>
    %379 = arith.divf %377, %378 : vector<2x48xf32>
    %380 = vector.extract_strided_slice %357 {offsets = [0, 48], sizes = [2, 16], strides = [1, 1]} : vector<2x64xf32> to vector<2x16xf32>
    %381 = math.tanh %380 : vector<2x16xf32>
    %382 = vector.extract_strided_slice %379 {offsets = [0, 0], sizes = [2, 16], strides = [1, 1]} : vector<2x48xf32> to vector<2x16xf32>
    %383 = vector.extract_strided_slice %379 {offsets = [0, 16], sizes = [2, 16], strides = [1, 1]} : vector<2x48xf32> to vector<2x16xf32>
    %384 = vector.extract_strided_slice %379 {offsets = [0, 32], sizes = [2, 16], strides = [1, 1]} : vector<2x48xf32> to vector<2x16xf32>
    %385 = arith.mulf %383, %323 : vector<2x16xf32>
    %386 = arith.mulf %382, %381 : vector<2x16xf32>
    %387 = arith.addf %385, %386 : vector<2x16xf32>
    %388 = math.tanh %387 : vector<2x16xf32>
    %389 = arith.mulf %384, %388 : vector<2x16xf32>
    %390 = vector.broadcast %341 : i32 to vector<2x1xi32>
    %391 = arith.cmpi slt, %390, %3 : vector<2x1xi32>
    %392 = vector.broadcast %342 : i32 to vector<2x1xi32>
    %393 = arith.cmpi slt, %392, %3 : vector<2x1xi32>
    %394 = vector.shape_cast %391 : vector<2x1xi1> to vector<2x1xi1>
    %395 = vector.broadcast %394 : vector<2x1xi1> to vector<2x16xi1>
    %396 = arith.select %395, %373, %314 : vector<2x16xi1>, vector<2x16xf32>
    %397 = vector.shape_cast %391 : vector<2x1xi1> to vector<2x1xi1>
    %398 = vector.broadcast %397 : vector<2x1xi1> to vector<2x16xi1>
    %399 = arith.select %398, %371, %317 : vector<2x16xi1>, vector<2x16xf32>
    %400 = vector.shape_cast %393 : vector<2x1xi1> to vector<2x1xi1>
    %401 = vector.broadcast %400 : vector<2x1xi1> to vector<2x16xi1>
    %402 = arith.select %401, %389, %320 : vector<2x16xi1>, vector<2x16xf32>
    %403 = vector.shape_cast %393 : vector<2x1xi1> to vector<2x1xi1>
    %404 = vector.broadcast %403 : vector<2x1xi1> to vector<2x16xi1>
    %405 = arith.select %404, %387, %323 : vector<2x16xi1>, vector<2x16xf32>
    %cst_108 = arith.constant 0.000000e+00 : f32
    %406 = vector.shape_cast %391 : vector<2x1xi1> to vector<2x1xi1>
    %407 = vector.broadcast %406 : vector<2x1xi1> to vector<2x16xi1>
    %408 = vector.broadcast %cst_108 : f32 to vector<2x16xf32>
    %409 = arith.select %407, %396, %408 : vector<2x16xi1>, vector<2x16xf32>
    %410 = arith.index_cast %c4_i32 : i32 to index
    %c0_109 = arith.constant 0 : index
    %c0_110 = arith.constant 0 : index
    %411 = vector.load %arg6[%410, %c0_109, %c0_110] : memref<8x2x16xf32, #tpu.memory_space<vmem>>, vector<1x2x16xf32>
    %412 = vector.shape_cast %411 : vector<1x2x16xf32> to vector<2x16xf32>
    %413 = vector.shape_cast %409 : vector<2x16xf32> to vector<1x2x16xf32>
    tpu.vector_store %arg6[%410, %c0_109, %c0_110], %413 {strides = array<i32>} : memref<8x2x16xf32, #tpu.memory_space<vmem>>, vector<1x2x16xf32>,
    %cst_111 = arith.constant 0.000000e+00 : f32
    %414 = vector.shape_cast %393 : vector<2x1xi1> to vector<2x1xi1>
    %415 = vector.broadcast %414 : vector<2x1xi1> to vector<2x16xi1>
    %416 = vector.broadcast %cst_111 : f32 to vector<2x16xf32>
    %417 = arith.select %415, %402, %416 : vector<2x16xi1>, vector<2x16xf32>
    %c7_i32_112 = arith.constant 7 : i32
    %418 = arith.subi %c7_i32_112, %c4_i32 : i32
    %419 = arith.index_cast %418 : i32 to index
    %c0_113 = arith.constant 0 : index
    %c0_114 = arith.constant 0 : index
    %420 = vector.load %arg7[%419, %c0_113, %c0_114] : memref<8x2x16xf32, #tpu.memory_space<vmem>>, vector<1x2x16xf32>
    %421 = vector.shape_cast %420 : vector<1x2x16xf32> to vector<2x16xf32>
    %422 = vector.shape_cast %417 : vector<2x16xf32> to vector<1x2x16xf32>
    tpu.vector_store %arg7[%419, %c0_113, %c0_114], %422 {strides = array<i32>} : memref<8x2x16xf32, #tpu.memory_space<vmem>>, vector<1x2x16xf32>,
    %c5_i32 = arith.constant 5 : i32
    %423 = arith.addi %4, %c5_i32 : i32
    %c7_i32_115 = arith.constant 7 : i32
    %424 = arith.subi %c7_i32_115, %423 : i32
    %425 = arith.index_cast %c5_i32 : i32 to index
    %c0_116 = arith.constant 0 : index
    %c0_117 = arith.constant 0 : index
    %426 = vector.load %arg2[%425, %c0_116, %c0_117] : memref<8x2x64xf32, #tpu.memory_space<vmem>>, vector<1x2x64xf32>
    %427 = vector.shape_cast %426 : vector<1x2x64xf32> to vector<2x64xf32>
    %428 = arith.truncf %396 : vector<2x16xf32> to vector<2x16xbf16>
    %c0_118 = arith.constant 0 : index
    %c0_119 = arith.constant 0 : index
    %429 = vector.load %arg4[%c0_118, %c0_119] : memref<16x64xbf16, #tpu.memory_space<vmem>>, vector<16x64xbf16>
    %cst_120 = arith.constant dense<0.000000e+00> : vector<2x64xf32>
    %430 = tpu.matmul %428, %429, %cst_120 {dimension_numbers = #tpu.dot_dimension_numbers<[1], [0], [0], [1], [0, 0, 1, 1], [], []>} : vector<2x16xbf16>, vector<16x64xbf16>, vector<2x64xf32> -> vector<2x64xf32>
    %431 = arith.addf %427, %430 : vector<2x64xf32>
    %c7_i32_121 = arith.constant 7 : i32
    %432 = arith.subi %c7_i32_121, %c5_i32 : i32
    %433 = arith.index_cast %432 : i32 to index
    %c0_122 = arith.constant 0 : index
    %c0_123 = arith.constant 0 : index
    %434 = vector.load %arg3[%433, %c0_122, %c0_123] : memref<8x2x64xf32, #tpu.memory_space<vmem>>, vector<1x2x64xf32>
    %435 = vector.shape_cast %434 : vector<1x2x64xf32> to vector<2x64xf32>
    %436 = arith.truncf %402 : vector<2x16xf32> to vector<2x16xbf16>
    %c0_124 = arith.constant 0 : index
    %c0_125 = arith.constant 0 : index
    %437 = vector.load %arg5[%c0_124, %c0_125] : memref<16x64xbf16, #tpu.memory_space<vmem>>, vector<16x64xbf16>
    %cst_126 = arith.constant dense<0.000000e+00> : vector<2x64xf32>
    %438 = tpu.matmul %436, %437, %cst_126 {dimension_numbers = #tpu.dot_dimension_numbers<[1], [0], [0], [1], [0, 0, 1, 1], [], []>} : vector<2x16xbf16>, vector<16x64xbf16>, vector<2x64xf32> -> vector<2x64xf32>
    %439 = arith.addf %435, %438 : vector<2x64xf32>
    %440 = vector.extract_strided_slice %431 {offsets = [0, 0], sizes = [2, 48], strides = [1, 1]} : vector<2x64xf32> to vector<2x48xf32>
    %441 = arith.negf %440 : vector<2x48xf32>
    %442 = math.exp %441 : vector<2x48xf32>
    %cst_127 = arith.constant 1.000000e+00 : f32
    %443 = vector.broadcast %cst_127 : f32 to vector<2x48xf32>
    %444 = arith.addf %443, %442 : vector<2x48xf32>
    %445 = arith.divf %443, %444 : vector<2x48xf32>
    %446 = vector.extract_strided_slice %431 {offsets = [0, 48], sizes = [2, 16], strides = [1, 1]} : vector<2x64xf32> to vector<2x16xf32>
    %447 = math.tanh %446 : vector<2x16xf32>
    %448 = vector.extract_strided_slice %445 {offsets = [0, 0], sizes = [2, 16], strides = [1, 1]} : vector<2x48xf32> to vector<2x16xf32>
    %449 = vector.extract_strided_slice %445 {offsets = [0, 16], sizes = [2, 16], strides = [1, 1]} : vector<2x48xf32> to vector<2x16xf32>
    %450 = vector.extract_strided_slice %445 {offsets = [0, 32], sizes = [2, 16], strides = [1, 1]} : vector<2x48xf32> to vector<2x16xf32>
    %451 = arith.mulf %449, %399 : vector<2x16xf32>
    %452 = arith.mulf %448, %447 : vector<2x16xf32>
    %453 = arith.addf %451, %452 : vector<2x16xf32>
    %454 = math.tanh %453 : vector<2x16xf32>
    %455 = arith.mulf %450, %454 : vector<2x16xf32>
    %456 = vector.extract_strided_slice %439 {offsets = [0, 0], sizes = [2, 48], strides = [1, 1]} : vector<2x64xf32> to vector<2x48xf32>
    %457 = arith.negf %456 : vector<2x48xf32>
    %458 = math.exp %457 : vector<2x48xf32>
    %cst_128 = arith.constant 1.000000e+00 : f32
    %459 = vector.broadcast %cst_128 : f32 to vector<2x48xf32>
    %460 = arith.addf %459, %458 : vector<2x48xf32>
    %461 = arith.divf %459, %460 : vector<2x48xf32>
    %462 = vector.extract_strided_slice %439 {offsets = [0, 48], sizes = [2, 16], strides = [1, 1]} : vector<2x64xf32> to vector<2x16xf32>
    %463 = math.tanh %462 : vector<2x16xf32>
    %464 = vector.extract_strided_slice %461 {offsets = [0, 0], sizes = [2, 16], strides = [1, 1]} : vector<2x48xf32> to vector<2x16xf32>
    %465 = vector.extract_strided_slice %461 {offsets = [0, 16], sizes = [2, 16], strides = [1, 1]} : vector<2x48xf32> to vector<2x16xf32>
    %466 = vector.extract_strided_slice %461 {offsets = [0, 32], sizes = [2, 16], strides = [1, 1]} : vector<2x48xf32> to vector<2x16xf32>
    %467 = arith.mulf %465, %405 : vector<2x16xf32>
    %468 = arith.mulf %464, %463 : vector<2x16xf32>
    %469 = arith.addf %467, %468 : vector<2x16xf32>
    %470 = math.tanh %469 : vector<2x16xf32>
    %471 = arith.mulf %466, %470 : vector<2x16xf32>
    %472 = vector.broadcast %423 : i32 to vector<2x1xi32>
    %473 = arith.cmpi slt, %472, %3 : vector<2x1xi32>
    %474 = vector.broadcast %424 : i32 to vector<2x1xi32>
    %475 = arith.cmpi slt, %474, %3 : vector<2x1xi32>
    %476 = vector.shape_cast %473 : vector<2x1xi1> to vector<2x1xi1>
    %477 = vector.broadcast %476 : vector<2x1xi1> to vector<2x16xi1>
    %478 = arith.select %477, %455, %396 : vector<2x16xi1>, vector<2x16xf32>
    %479 = vector.shape_cast %473 : vector<2x1xi1> to vector<2x1xi1>
    %480 = vector.broadcast %479 : vector<2x1xi1> to vector<2x16xi1>
    %481 = arith.select %480, %453, %399 : vector<2x16xi1>, vector<2x16xf32>
    %482 = vector.shape_cast %475 : vector<2x1xi1> to vector<2x1xi1>
    %483 = vector.broadcast %482 : vector<2x1xi1> to vector<2x16xi1>
    %484 = arith.select %483, %471, %402 : vector<2x16xi1>, vector<2x16xf32>
    %485 = vector.shape_cast %475 : vector<2x1xi1> to vector<2x1xi1>
    %486 = vector.broadcast %485 : vector<2x1xi1> to vector<2x16xi1>
    %487 = arith.select %486, %469, %405 : vector<2x16xi1>, vector<2x16xf32>
    %cst_129 = arith.constant 0.000000e+00 : f32
    %488 = vector.shape_cast %473 : vector<2x1xi1> to vector<2x1xi1>
    %489 = vector.broadcast %488 : vector<2x1xi1> to vector<2x16xi1>
    %490 = vector.broadcast %cst_129 : f32 to vector<2x16xf32>
    %491 = arith.select %489, %478, %490 : vector<2x16xi1>, vector<2x16xf32>
    %492 = arith.index_cast %c5_i32 : i32 to index
    %c0_130 = arith.constant 0 : index
    %c0_131 = arith.constant 0 : index
    %493 = vector.load %arg6[%492, %c0_130, %c0_131] : memref<8x2x16xf32, #tpu.memory_space<vmem>>, vector<1x2x16xf32>
    %494 = vector.shape_cast %493 : vector<1x2x16xf32> to vector<2x16xf32>
    %495 = vector.shape_cast %491 : vector<2x16xf32> to vector<1x2x16xf32>
    tpu.vector_store %arg6[%492, %c0_130, %c0_131], %495 {strides = array<i32>} : memref<8x2x16xf32, #tpu.memory_space<vmem>>, vector<1x2x16xf32>,
    %cst_132 = arith.constant 0.000000e+00 : f32
    %496 = vector.shape_cast %475 : vector<2x1xi1> to vector<2x1xi1>
    %497 = vector.broadcast %496 : vector<2x1xi1> to vector<2x16xi1>
    %498 = vector.broadcast %cst_132 : f32 to vector<2x16xf32>
    %499 = arith.select %497, %484, %498 : vector<2x16xi1>, vector<2x16xf32>
    %c7_i32_133 = arith.constant 7 : i32
    %500 = arith.subi %c7_i32_133, %c5_i32 : i32
    %501 = arith.index_cast %500 : i32 to index
    %c0_134 = arith.constant 0 : index
    %c0_135 = arith.constant 0 : index
    %502 = vector.load %arg7[%501, %c0_134, %c0_135] : memref<8x2x16xf32, #tpu.memory_space<vmem>>, vector<1x2x16xf32>
    %503 = vector.shape_cast %502 : vector<1x2x16xf32> to vector<2x16xf32>
    %504 = vector.shape_cast %499 : vector<2x16xf32> to vector<1x2x16xf32>
    tpu.vector_store %arg7[%501, %c0_134, %c0_135], %504 {strides = array<i32>} : memref<8x2x16xf32, #tpu.memory_space<vmem>>, vector<1x2x16xf32>,
    %c6_i32 = arith.constant 6 : i32
    %505 = arith.addi %4, %c6_i32 : i32
    %c7_i32_136 = arith.constant 7 : i32
    %506 = arith.subi %c7_i32_136, %505 : i32
    %507 = arith.index_cast %c6_i32 : i32 to index
    %c0_137 = arith.constant 0 : index
    %c0_138 = arith.constant 0 : index
    %508 = vector.load %arg2[%507, %c0_137, %c0_138] : memref<8x2x64xf32, #tpu.memory_space<vmem>>, vector<1x2x64xf32>
    %509 = vector.shape_cast %508 : vector<1x2x64xf32> to vector<2x64xf32>
    %510 = arith.truncf %478 : vector<2x16xf32> to vector<2x16xbf16>
    %c0_139 = arith.constant 0 : index
    %c0_140 = arith.constant 0 : index
    %511 = vector.load %arg4[%c0_139, %c0_140] : memref<16x64xbf16, #tpu.memory_space<vmem>>, vector<16x64xbf16>
    %cst_141 = arith.constant dense<0.000000e+00> : vector<2x64xf32>
    %512 = tpu.matmul %510, %511, %cst_141 {dimension_numbers = #tpu.dot_dimension_numbers<[1], [0], [0], [1], [0, 0, 1, 1], [], []>} : vector<2x16xbf16>, vector<16x64xbf16>, vector<2x64xf32> -> vector<2x64xf32>
    %513 = arith.addf %509, %512 : vector<2x64xf32>
    %c7_i32_142 = arith.constant 7 : i32
    %514 = arith.subi %c7_i32_142, %c6_i32 : i32
    %515 = arith.index_cast %514 : i32 to index
    %c0_143 = arith.constant 0 : index
    %c0_144 = arith.constant 0 : index
    %516 = vector.load %arg3[%515, %c0_143, %c0_144] : memref<8x2x64xf32, #tpu.memory_space<vmem>>, vector<1x2x64xf32>
    %517 = vector.shape_cast %516 : vector<1x2x64xf32> to vector<2x64xf32>
    %518 = arith.truncf %484 : vector<2x16xf32> to vector<2x16xbf16>
    %c0_145 = arith.constant 0 : index
    %c0_146 = arith.constant 0 : index
    %519 = vector.load %arg5[%c0_145, %c0_146] : memref<16x64xbf16, #tpu.memory_space<vmem>>, vector<16x64xbf16>
    %cst_147 = arith.constant dense<0.000000e+00> : vector<2x64xf32>
    %520 = tpu.matmul %518, %519, %cst_147 {dimension_numbers = #tpu.dot_dimension_numbers<[1], [0], [0], [1], [0, 0, 1, 1], [], []>} : vector<2x16xbf16>, vector<16x64xbf16>, vector<2x64xf32> -> vector<2x64xf32>
    %521 = arith.addf %517, %520 : vector<2x64xf32>
    %522 = vector.extract_strided_slice %513 {offsets = [0, 0], sizes = [2, 48], strides = [1, 1]} : vector<2x64xf32> to vector<2x48xf32>
    %523 = arith.negf %522 : vector<2x48xf32>
    %524 = math.exp %523 : vector<2x48xf32>
    %cst_148 = arith.constant 1.000000e+00 : f32
    %525 = vector.broadcast %cst_148 : f32 to vector<2x48xf32>
    %526 = arith.addf %525, %524 : vector<2x48xf32>
    %527 = arith.divf %525, %526 : vector<2x48xf32>
    %528 = vector.extract_strided_slice %513 {offsets = [0, 48], sizes = [2, 16], strides = [1, 1]} : vector<2x64xf32> to vector<2x16xf32>
    %529 = math.tanh %528 : vector<2x16xf32>
    %530 = vector.extract_strided_slice %527 {offsets = [0, 0], sizes = [2, 16], strides = [1, 1]} : vector<2x48xf32> to vector<2x16xf32>
    %531 = vector.extract_strided_slice %527 {offsets = [0, 16], sizes = [2, 16], strides = [1, 1]} : vector<2x48xf32> to vector<2x16xf32>
    %532 = vector.extract_strided_slice %527 {offsets = [0, 32], sizes = [2, 16], strides = [1, 1]} : vector<2x48xf32> to vector<2x16xf32>
    %533 = arith.mulf %531, %481 : vector<2x16xf32>
    %534 = arith.mulf %530, %529 : vector<2x16xf32>
    %535 = arith.addf %533, %534 : vector<2x16xf32>
    %536 = math.tanh %535 : vector<2x16xf32>
    %537 = arith.mulf %532, %536 : vector<2x16xf32>
    %538 = vector.extract_strided_slice %521 {offsets = [0, 0], sizes = [2, 48], strides = [1, 1]} : vector<2x64xf32> to vector<2x48xf32>
    %539 = arith.negf %538 : vector<2x48xf32>
    %540 = math.exp %539 : vector<2x48xf32>
    %cst_149 = arith.constant 1.000000e+00 : f32
    %541 = vector.broadcast %cst_149 : f32 to vector<2x48xf32>
    %542 = arith.addf %541, %540 : vector<2x48xf32>
    %543 = arith.divf %541, %542 : vector<2x48xf32>
    %544 = vector.extract_strided_slice %521 {offsets = [0, 48], sizes = [2, 16], strides = [1, 1]} : vector<2x64xf32> to vector<2x16xf32>
    %545 = math.tanh %544 : vector<2x16xf32>
    %546 = vector.extract_strided_slice %543 {offsets = [0, 0], sizes = [2, 16], strides = [1, 1]} : vector<2x48xf32> to vector<2x16xf32>
    %547 = vector.extract_strided_slice %543 {offsets = [0, 16], sizes = [2, 16], strides = [1, 1]} : vector<2x48xf32> to vector<2x16xf32>
    %548 = vector.extract_strided_slice %543 {offsets = [0, 32], sizes = [2, 16], strides = [1, 1]} : vector<2x48xf32> to vector<2x16xf32>
    %549 = arith.mulf %547, %487 : vector<2x16xf32>
    %550 = arith.mulf %546, %545 : vector<2x16xf32>
    %551 = arith.addf %549, %550 : vector<2x16xf32>
    %552 = math.tanh %551 : vector<2x16xf32>
    %553 = arith.mulf %548, %552 : vector<2x16xf32>
    %554 = vector.broadcast %505 : i32 to vector<2x1xi32>
    %555 = arith.cmpi slt, %554, %3 : vector<2x1xi32>
    %556 = vector.broadcast %506 : i32 to vector<2x1xi32>
    %557 = arith.cmpi slt, %556, %3 : vector<2x1xi32>
    %558 = vector.shape_cast %555 : vector<2x1xi1> to vector<2x1xi1>
    %559 = vector.broadcast %558 : vector<2x1xi1> to vector<2x16xi1>
    %560 = arith.select %559, %537, %478 : vector<2x16xi1>, vector<2x16xf32>
    %561 = vector.shape_cast %555 : vector<2x1xi1> to vector<2x1xi1>
    %562 = vector.broadcast %561 : vector<2x1xi1> to vector<2x16xi1>
    %563 = arith.select %562, %535, %481 : vector<2x16xi1>, vector<2x16xf32>
    %564 = vector.shape_cast %557 : vector<2x1xi1> to vector<2x1xi1>
    %565 = vector.broadcast %564 : vector<2x1xi1> to vector<2x16xi1>
    %566 = arith.select %565, %553, %484 : vector<2x16xi1>, vector<2x16xf32>
    %567 = vector.shape_cast %557 : vector<2x1xi1> to vector<2x1xi1>
    %568 = vector.broadcast %567 : vector<2x1xi1> to vector<2x16xi1>
    %569 = arith.select %568, %551, %487 : vector<2x16xi1>, vector<2x16xf32>
    %cst_150 = arith.constant 0.000000e+00 : f32
    %570 = vector.shape_cast %555 : vector<2x1xi1> to vector<2x1xi1>
    %571 = vector.broadcast %570 : vector<2x1xi1> to vector<2x16xi1>
    %572 = vector.broadcast %cst_150 : f32 to vector<2x16xf32>
    %573 = arith.select %571, %560, %572 : vector<2x16xi1>, vector<2x16xf32>
    %574 = arith.index_cast %c6_i32 : i32 to index
    %c0_151 = arith.constant 0 : index
    %c0_152 = arith.constant 0 : index
    %575 = vector.load %arg6[%574, %c0_151, %c0_152] : memref<8x2x16xf32, #tpu.memory_space<vmem>>, vector<1x2x16xf32>
    %576 = vector.shape_cast %575 : vector<1x2x16xf32> to vector<2x16xf32>
    %577 = vector.shape_cast %573 : vector<2x16xf32> to vector<1x2x16xf32>
    tpu.vector_store %arg6[%574, %c0_151, %c0_152], %577 {strides = array<i32>} : memref<8x2x16xf32, #tpu.memory_space<vmem>>, vector<1x2x16xf32>,
    %cst_153 = arith.constant 0.000000e+00 : f32
    %578 = vector.shape_cast %557 : vector<2x1xi1> to vector<2x1xi1>
    %579 = vector.broadcast %578 : vector<2x1xi1> to vector<2x16xi1>
    %580 = vector.broadcast %cst_153 : f32 to vector<2x16xf32>
    %581 = arith.select %579, %566, %580 : vector<2x16xi1>, vector<2x16xf32>
    %c7_i32_154 = arith.constant 7 : i32
    %582 = arith.subi %c7_i32_154, %c6_i32 : i32
    %583 = arith.index_cast %582 : i32 to index
    %c0_155 = arith.constant 0 : index
    %c0_156 = arith.constant 0 : index
    %584 = vector.load %arg7[%583, %c0_155, %c0_156] : memref<8x2x16xf32, #tpu.memory_space<vmem>>, vector<1x2x16xf32>
    %585 = vector.shape_cast %584 : vector<1x2x16xf32> to vector<2x16xf32>
    %586 = vector.shape_cast %581 : vector<2x16xf32> to vector<1x2x16xf32>
    tpu.vector_store %arg7[%583, %c0_155, %c0_156], %586 {strides = array<i32>} : memref<8x2x16xf32, #tpu.memory_space<vmem>>, vector<1x2x16xf32>,
    %c7_i32_157 = arith.constant 7 : i32
    %587 = arith.addi %4, %c7_i32_157 : i32
    %c7_i32_158 = arith.constant 7 : i32
    %588 = arith.subi %c7_i32_158, %587 : i32
    %589 = arith.index_cast %c7_i32_157 : i32 to index
    %c0_159 = arith.constant 0 : index
    %c0_160 = arith.constant 0 : index
    %590 = vector.load %arg2[%589, %c0_159, %c0_160] : memref<8x2x64xf32, #tpu.memory_space<vmem>>, vector<1x2x64xf32>
    %591 = vector.shape_cast %590 : vector<1x2x64xf32> to vector<2x64xf32>
    %592 = arith.truncf %560 : vector<2x16xf32> to vector<2x16xbf16>
    %c0_161 = arith.constant 0 : index
    %c0_162 = arith.constant 0 : index
    %593 = vector.load %arg4[%c0_161, %c0_162] : memref<16x64xbf16, #tpu.memory_space<vmem>>, vector<16x64xbf16>
    %cst_163 = arith.constant dense<0.000000e+00> : vector<2x64xf32>
    %594 = tpu.matmul %592, %593, %cst_163 {dimension_numbers = #tpu.dot_dimension_numbers<[1], [0], [0], [1], [0, 0, 1, 1], [], []>} : vector<2x16xbf16>, vector<16x64xbf16>, vector<2x64xf32> -> vector<2x64xf32>
    %595 = arith.addf %591, %594 : vector<2x64xf32>
    %c7_i32_164 = arith.constant 7 : i32
    %596 = arith.subi %c7_i32_164, %c7_i32_157 : i32
    %597 = arith.index_cast %596 : i32 to index
    %c0_165 = arith.constant 0 : index
    %c0_166 = arith.constant 0 : index
    %598 = vector.load %arg3[%597, %c0_165, %c0_166] : memref<8x2x64xf32, #tpu.memory_space<vmem>>, vector<1x2x64xf32>
    %599 = vector.shape_cast %598 : vector<1x2x64xf32> to vector<2x64xf32>
    %600 = arith.truncf %566 : vector<2x16xf32> to vector<2x16xbf16>
    %c0_167 = arith.constant 0 : index
    %c0_168 = arith.constant 0 : index
    %601 = vector.load %arg5[%c0_167, %c0_168] : memref<16x64xbf16, #tpu.memory_space<vmem>>, vector<16x64xbf16>
    %cst_169 = arith.constant dense<0.000000e+00> : vector<2x64xf32>
    %602 = tpu.matmul %600, %601, %cst_169 {dimension_numbers = #tpu.dot_dimension_numbers<[1], [0], [0], [1], [0, 0, 1, 1], [], []>} : vector<2x16xbf16>, vector<16x64xbf16>, vector<2x64xf32> -> vector<2x64xf32>
    %603 = arith.addf %599, %602 : vector<2x64xf32>
    %604 = vector.extract_strided_slice %595 {offsets = [0, 0], sizes = [2, 48], strides = [1, 1]} : vector<2x64xf32> to vector<2x48xf32>
    %605 = arith.negf %604 : vector<2x48xf32>
    %606 = math.exp %605 : vector<2x48xf32>
    %cst_170 = arith.constant 1.000000e+00 : f32
    %607 = vector.broadcast %cst_170 : f32 to vector<2x48xf32>
    %608 = arith.addf %607, %606 : vector<2x48xf32>
    %609 = arith.divf %607, %608 : vector<2x48xf32>
    %610 = vector.extract_strided_slice %595 {offsets = [0, 48], sizes = [2, 16], strides = [1, 1]} : vector<2x64xf32> to vector<2x16xf32>
    %611 = math.tanh %610 : vector<2x16xf32>
    %612 = vector.extract_strided_slice %609 {offsets = [0, 0], sizes = [2, 16], strides = [1, 1]} : vector<2x48xf32> to vector<2x16xf32>
    %613 = vector.extract_strided_slice %609 {offsets = [0, 16], sizes = [2, 16], strides = [1, 1]} : vector<2x48xf32> to vector<2x16xf32>
    %614 = vector.extract_strided_slice %609 {offsets = [0, 32], sizes = [2, 16], strides = [1, 1]} : vector<2x48xf32> to vector<2x16xf32>
    %615 = arith.mulf %613, %563 : vector<2x16xf32>
    %616 = arith.mulf %612, %611 : vector<2x16xf32>
    %617 = arith.addf %615, %616 : vector<2x16xf32>
    %618 = math.tanh %617 : vector<2x16xf32>
    %619 = arith.mulf %614, %618 : vector<2x16xf32>
    %620 = vector.extract_strided_slice %603 {offsets = [0, 0], sizes = [2, 48], strides = [1, 1]} : vector<2x64xf32> to vector<2x48xf32>
    %621 = arith.negf %620 : vector<2x48xf32>
    %622 = math.exp %621 : vector<2x48xf32>
    %cst_171 = arith.constant 1.000000e+00 : f32
    %623 = vector.broadcast %cst_171 : f32 to vector<2x48xf32>
    %624 = arith.addf %623, %622 : vector<2x48xf32>
    %625 = arith.divf %623, %624 : vector<2x48xf32>
    %626 = vector.extract_strided_slice %603 {offsets = [0, 48], sizes = [2, 16], strides = [1, 1]} : vector<2x64xf32> to vector<2x16xf32>
    %627 = math.tanh %626 : vector<2x16xf32>
    %628 = vector.extract_strided_slice %625 {offsets = [0, 0], sizes = [2, 16], strides = [1, 1]} : vector<2x48xf32> to vector<2x16xf32>
    %629 = vector.extract_strided_slice %625 {offsets = [0, 16], sizes = [2, 16], strides = [1, 1]} : vector<2x48xf32> to vector<2x16xf32>
    %630 = vector.extract_strided_slice %625 {offsets = [0, 32], sizes = [2, 16], strides = [1, 1]} : vector<2x48xf32> to vector<2x16xf32>
    %631 = arith.mulf %629, %569 : vector<2x16xf32>
    %632 = arith.mulf %628, %627 : vector<2x16xf32>
    %633 = arith.addf %631, %632 : vector<2x16xf32>
    %634 = math.tanh %633 : vector<2x16xf32>
    %635 = arith.mulf %630, %634 : vector<2x16xf32>
    %636 = vector.broadcast %587 : i32 to vector<2x1xi32>
    %637 = arith.cmpi slt, %636, %3 : vector<2x1xi32>
    %638 = vector.broadcast %588 : i32 to vector<2x1xi32>
    %639 = arith.cmpi slt, %638, %3 : vector<2x1xi32>
    %640 = vector.shape_cast %637 : vector<2x1xi1> to vector<2x1xi1>
    %641 = vector.broadcast %640 : vector<2x1xi1> to vector<2x16xi1>
    %642 = arith.select %641, %619, %560 : vector<2x16xi1>, vector<2x16xf32>
    %643 = vector.shape_cast %637 : vector<2x1xi1> to vector<2x1xi1>
    %644 = vector.broadcast %643 : vector<2x1xi1> to vector<2x16xi1>
    %645 = arith.select %644, %617, %563 : vector<2x16xi1>, vector<2x16xf32>
    %646 = vector.shape_cast %639 : vector<2x1xi1> to vector<2x1xi1>
    %647 = vector.broadcast %646 : vector<2x1xi1> to vector<2x16xi1>
    %648 = arith.select %647, %635, %566 : vector<2x16xi1>, vector<2x16xf32>
    %649 = vector.shape_cast %639 : vector<2x1xi1> to vector<2x1xi1>
    %650 = vector.broadcast %649 : vector<2x1xi1> to vector<2x16xi1>
    %651 = arith.select %650, %633, %569 : vector<2x16xi1>, vector<2x16xf32>
    %cst_172 = arith.constant 0.000000e+00 : f32
    %652 = vector.shape_cast %637 : vector<2x1xi1> to vector<2x1xi1>
    %653 = vector.broadcast %652 : vector<2x1xi1> to vector<2x16xi1>
    %654 = vector.broadcast %cst_172 : f32 to vector<2x16xf32>
    %655 = arith.select %653, %642, %654 : vector<2x16xi1>, vector<2x16xf32>
    %656 = arith.index_cast %c7_i32_157 : i32 to index
    %c0_173 = arith.constant 0 : index
    %c0_174 = arith.constant 0 : index
    %657 = vector.load %arg6[%656, %c0_173, %c0_174] : memref<8x2x16xf32, #tpu.memory_space<vmem>>, vector<1x2x16xf32>
    %658 = vector.shape_cast %657 : vector<1x2x16xf32> to vector<2x16xf32>
    %659 = vector.shape_cast %655 : vector<2x16xf32> to vector<1x2x16xf32>
    tpu.vector_store %arg6[%656, %c0_173, %c0_174], %659 {strides = array<i32>} : memref<8x2x16xf32, #tpu.memory_space<vmem>>, vector<1x2x16xf32>,
    %cst_175 = arith.constant 0.000000e+00 : f32
    %660 = vector.shape_cast %639 : vector<2x1xi1> to vector<2x1xi1>
    %661 = vector.broadcast %660 : vector<2x1xi1> to vector<2x16xi1>
    %662 = vector.broadcast %cst_175 : f32 to vector<2x16xf32>
    %663 = arith.select %661, %648, %662 : vector<2x16xi1>, vector<2x16xf32>
    %c7_i32_176 = arith.constant 7 : i32
    %664 = arith.subi %c7_i32_176, %c7_i32_157 : i32
    %665 = arith.index_cast %664 : i32 to index
    %c0_177 = arith.constant 0 : index
    %c0_178 = arith.constant 0 : index
    %666 = vector.load %arg7[%665, %c0_177, %c0_178] : memref<8x2x16xf32, #tpu.memory_space<vmem>>, vector<1x2x16xf32>
    %667 = vector.shape_cast %666 : vector<1x2x16xf32> to vector<2x16xf32>
    %668 = vector.shape_cast %663 : vector<2x16xf32> to vector<1x2x16xf32>
    tpu.vector_store %arg7[%665, %c0_177, %c0_178], %668 {strides = array<i32>} : memref<8x2x16xf32, #tpu.memory_space<vmem>>, vector<1x2x16xf32>,
    %c8_i32_179 = arith.constant 8 : i32
    %c0_180 = arith.constant 0 : index
    %c0_181 = arith.constant 0 : index
    %c0_182 = arith.constant 0 : index
    %669 = vector.load %arg10[%c0_180, %c0_181, %c0_182] : memref<4x2x16xf32, #tpu.memory_space<vmem>>, vector<1x2x16xf32>
    %670 = vector.shape_cast %669 : vector<1x2x16xf32> to vector<2x16xf32>
    %671 = vector.shape_cast %642 : vector<2x16xf32> to vector<1x2x16xf32>
    tpu.vector_store %arg10[%c0_180, %c0_181, %c0_182], %671 {strides = array<i32>} : memref<4x2x16xf32, #tpu.memory_space<vmem>>, vector<1x2x16xf32>,
    %c1_183 = arith.constant 1 : index
    %c0_184 = arith.constant 0 : index
    %c0_185 = arith.constant 0 : index
    %672 = vector.load %arg10[%c1_183, %c0_184, %c0_185] : memref<4x2x16xf32, #tpu.memory_space<vmem>>, vector<1x2x16xf32>
    %673 = vector.shape_cast %672 : vector<1x2x16xf32> to vector<2x16xf32>
    %674 = vector.shape_cast %645 : vector<2x16xf32> to vector<1x2x16xf32>
    tpu.vector_store %arg10[%c1_183, %c0_184, %c0_185], %674 {strides = array<i32>} : memref<4x2x16xf32, #tpu.memory_space<vmem>>, vector<1x2x16xf32>,
    %c2_186 = arith.constant 2 : index
    %c0_187 = arith.constant 0 : index
    %c0_188 = arith.constant 0 : index
    %675 = vector.load %arg10[%c2_186, %c0_187, %c0_188] : memref<4x2x16xf32, #tpu.memory_space<vmem>>, vector<1x2x16xf32>
    %676 = vector.shape_cast %675 : vector<1x2x16xf32> to vector<2x16xf32>
    %677 = vector.shape_cast %648 : vector<2x16xf32> to vector<1x2x16xf32>
    tpu.vector_store %arg10[%c2_186, %c0_187, %c0_188], %677 {strides = array<i32>} : memref<4x2x16xf32, #tpu.memory_space<vmem>>, vector<1x2x16xf32>,
    %c3_189 = arith.constant 3 : index
    %c0_190 = arith.constant 0 : index
    %c0_191 = arith.constant 0 : index
    %678 = vector.load %arg10[%c3_189, %c0_190, %c0_191] : memref<4x2x16xf32, #tpu.memory_space<vmem>>, vector<1x2x16xf32>
    %679 = vector.shape_cast %678 : vector<1x2x16xf32> to vector<2x16xf32>
    %680 = vector.shape_cast %651 : vector<2x16xf32> to vector<1x2x16xf32>
    tpu.vector_store %arg10[%c3_189, %c0_190, %c0_191], %680 {strides = array<i32>} : memref<4x2x16xf32, #tpu.memory_space<vmem>>, vector<1x2x16xf32>,
    %c0_192 = arith.constant 0 : index
    %c0_193 = arith.constant 0 : index
    %c0_194 = arith.constant 0 : index
    %681 = vector.load %arg8[%c0_192, %c0_193, %c0_194] : memref<2x2x16xf32, #tpu.memory_space<vmem>>, vector<1x2x16xf32>
    %682 = vector.shape_cast %681 : vector<1x2x16xf32> to vector<2x16xf32>
    %683 = vector.shape_cast %642 : vector<2x16xf32> to vector<1x2x16xf32>
    tpu.vector_store %arg8[%c0_192, %c0_193, %c0_194], %683 {strides = array<i32>} : memref<2x2x16xf32, #tpu.memory_space<vmem>>, vector<1x2x16xf32>,
    %c1_195 = arith.constant 1 : index
    %c0_196 = arith.constant 0 : index
    %c0_197 = arith.constant 0 : index
    %684 = vector.load %arg8[%c1_195, %c0_196, %c0_197] : memref<2x2x16xf32, #tpu.memory_space<vmem>>, vector<1x2x16xf32>
    %685 = vector.shape_cast %684 : vector<1x2x16xf32> to vector<2x16xf32>
    %686 = vector.shape_cast %648 : vector<2x16xf32> to vector<1x2x16xf32>
    tpu.vector_store %arg8[%c1_195, %c0_196, %c0_197], %686 {strides = array<i32>} : memref<2x2x16xf32, #tpu.memory_space<vmem>>, vector<1x2x16xf32>,
    %c0_198 = arith.constant 0 : index
    %c0_199 = arith.constant 0 : index
    %c0_200 = arith.constant 0 : index
    %687 = vector.load %arg9[%c0_198, %c0_199, %c0_200] : memref<2x2x16xf32, #tpu.memory_space<vmem>>, vector<1x2x16xf32>
    %688 = vector.shape_cast %687 : vector<1x2x16xf32> to vector<2x16xf32>
    %689 = vector.shape_cast %645 : vector<2x16xf32> to vector<1x2x16xf32>
    tpu.vector_store %arg9[%c0_198, %c0_199, %c0_200], %689 {strides = array<i32>} : memref<2x2x16xf32, #tpu.memory_space<vmem>>, vector<1x2x16xf32>,
    %c1_201 = arith.constant 1 : index
    %c0_202 = arith.constant 0 : index
    %c0_203 = arith.constant 0 : index
    %690 = vector.load %arg9[%c1_201, %c0_202, %c0_203] : memref<2x2x16xf32, #tpu.memory_space<vmem>>, vector<1x2x16xf32>
    %691 = vector.shape_cast %690 : vector<1x2x16xf32> to vector<2x16xf32>
    %692 = vector.shape_cast %651 : vector<2x16xf32> to vector<1x2x16xf32>
    tpu.vector_store %arg9[%c1_201, %c0_202, %c0_203], %692 {strides = array<i32>} : memref<2x2x16xf32, #tpu.memory_space<vmem>>, vector<1x2x16xf32>,
    return
  }
  func.func @transform_0(%arg0: i32) -> (i32, i32) {
    %c0_i32 = arith.constant 0 : i32
    %c0_i32_0 = arith.constant 0 : i32
    %c0_i32_1 = arith.constant 0 : i32
    return %c0_i32, %c0_i32_0 : i32, i32
  }
  func.func @transform_1(%arg0: i32) -> (i32, i32, i32) {
    %c0_i32 = arith.constant 0 : i32
    %c0_i32_0 = arith.constant 0 : i32
    %c0_i32_1 = arith.constant 0 : i32
    return %arg0, %c0_i32, %c0_i32_0 : i32, i32, i32
  }
  func.func @transform_2(%arg0: i32) -> (i32, i32, i32) {
    %c0_i32 = arith.constant 0 : i32
    %0 = arith.subi %c0_i32, %arg0 : i32
    %c0_i32_0 = arith.constant 0 : i32
    %c0_i32_1 = arith.constant 0 : i32
    %c0_i32_2 = arith.constant 0 : i32
    return %0, %c0_i32_0, %c0_i32_1 : i32, i32, i32
  }
  func.func @transform_3(%arg0: i32) -> (i32, i32) {
    %c0_i32 = arith.constant 0 : i32
    %c0_i32_0 = arith.constant 0 : i32
    %c0_i32_1 = arith.constant 0 : i32
    return %c0_i32, %c0_i32_0 : i32, i32
  }
  func.func @transform_4(%arg0: i32) -> (i32, i32) {
    %c0_i32 = arith.constant 0 : i32
    %c0_i32_0 = arith.constant 0 : i32
    %c0_i32_1 = arith.constant 0 : i32
    return %c0_i32, %c0_i32_0 : i32, i32
  }
  func.func @transform_5(%arg0: i32) -> (i32, i32, i32) {
    %c0_i32 = arith.constant 0 : i32
    %c0_i32_0 = arith.constant 0 : i32
    %c0_i32_1 = arith.constant 0 : i32
    return %arg0, %c0_i32, %c0_i32_0 : i32, i32, i32
  }
  func.func @transform_6(%arg0: i32) -> (i32, i32, i32) {
    %c0_i32 = arith.constant 0 : i32
    %0 = arith.subi %c0_i32, %arg0 : i32
    %c0_i32_0 = arith.constant 0 : i32
    %c0_i32_1 = arith.constant 0 : i32
    %c0_i32_2 = arith.constant 0 : i32
    return %0, %c0_i32_0, %c0_i32_1 : i32, i32, i32
  }
  func.func @transform_7(%arg0: i32) -> (i32, i32, i32) {
    %c0_i32 = arith.constant 0 : i32
    %c0_i32_0 = arith.constant 0 : i32
    %c0_i32_1 = arith.constant 0 : i32
    %c0_i32_2 = arith.constant 0 : i32
    return %c0_i32, %c0_i32_0, %c0_i32_1 : i32, i32, i32
  }
  func.func @transform_8(%arg0: i32) -> (i32, i32, i32) {
    %c0_i32 = arith.constant 0 : i32
    %c0_i32_0 = arith.constant 0 : i32
    %c0_i32_1 = arith.constant 0 : i32
    %c0_i32_2 = arith.constant 0 : i32
    return %c0_i32, %c0_i32_0, %c0_i32_1 : i32, i32, i32
  }
}

module attributes {stable_mosaic.version = 11 : i64} {
  func.func @_dual_linear_kernel(%arg0: i32, %arg1: memref<16x32xbf16, #tpu.memory_space<vmem>>, %arg2: memref<32x64xbf16, #tpu.memory_space<vmem>>, %arg3: memref<32x64xbf16, #tpu.memory_space<vmem>>, %arg4: memref<1x64xf32, #tpu.memory_space<vmem>>, %arg5: memref<1x64xf32, #tpu.memory_space<vmem>>, %arg6: memref<16x64xf32, #tpu.memory_space<vmem>>, %arg7: memref<16x64xf32, #tpu.memory_space<vmem>>) attributes {dimension_semantics = [#tpu.dimension_semantics<parallel>], iteration_bounds = array<i64: 1>, scalar_prefetch = 0 : i64, scratch_operands = 0 : i64, tpu.core_type = #tpu.core_type<tc>, window_params = [{transform_indices = @transform_0, window_bounds = array<i64: 16, 32>}, {pipeline_mode = #tpu.pipeline_mode<synchronous>, transform_indices = @transform_1, window_bounds = array<i64: 32, 64>}, {pipeline_mode = #tpu.pipeline_mode<synchronous>, transform_indices = @transform_2, window_bounds = array<i64: 32, 64>}, {pipeline_mode = #tpu.pipeline_mode<synchronous>, transform_indices = @transform_3, window_bounds = array<i64: 1, 64>}, {pipeline_mode = #tpu.pipeline_mode<synchronous>, transform_indices = @transform_4, window_bounds = array<i64: 1, 64>}, {transform_indices = @transform_5, window_bounds = array<i64: 16, 64>}, {transform_indices = @transform_6, window_bounds = array<i64: 16, 64>}]} {
    %c0 = arith.constant 0 : index
    %c0_0 = arith.constant 0 : index
    %0 = vector.load %arg1[%c0, %c0_0] : memref<16x32xbf16, #tpu.memory_space<vmem>>, vector<16x32xbf16>
    %c0_1 = arith.constant 0 : index
    %c0_2 = arith.constant 0 : index
    %1 = vector.load %arg2[%c0_1, %c0_2] : memref<32x64xbf16, #tpu.memory_space<vmem>>, vector<32x64xbf16>
    %cst = arith.constant dense<0.000000e+00> : vector<16x64xf32>
    %2 = tpu.matmul %0, %1, %cst {dimension_numbers = #tpu.dot_dimension_numbers<[1], [0], [0], [1], [0, 0, 1, 1], [], []>} : vector<16x32xbf16>, vector<32x64xbf16>, vector<16x64xf32> -> vector<16x64xf32>
    %c0_3 = arith.constant 0 : index
    %c0_4 = arith.constant 0 : index
    %3 = vector.load %arg4[%c0_3, %c0_4] : memref<1x64xf32, #tpu.memory_space<vmem>>, vector<1x64xf32>
    %4 = vector.broadcast %3 : vector<1x64xf32> to vector<16x64xf32>
    %5 = arith.addf %2, %4 : vector<16x64xf32>
    %c0_5 = arith.constant 0 : index
    %c0_6 = arith.constant 0 : index
    %6 = vector.load %arg6[%c0_5, %c0_6] : memref<16x64xf32, #tpu.memory_space<vmem>>, vector<16x64xf32>
    tpu.vector_store %arg6[%c0_5, %c0_6], %5 {strides = array<i32>} : memref<16x64xf32, #tpu.memory_space<vmem>>, vector<16x64xf32>,
    %c0_7 = arith.constant 0 : index
    %c0_8 = arith.constant 0 : index
    %7 = vector.load %arg3[%c0_7, %c0_8] : memref<32x64xbf16, #tpu.memory_space<vmem>>, vector<32x64xbf16>
    %cst_9 = arith.constant dense<0.000000e+00> : vector<16x64xf32>
    %8 = tpu.matmul %0, %7, %cst_9 {dimension_numbers = #tpu.dot_dimension_numbers<[1], [0], [0], [1], [0, 0, 1, 1], [], []>} : vector<16x32xbf16>, vector<32x64xbf16>, vector<16x64xf32> -> vector<16x64xf32>
    %c0_10 = arith.constant 0 : index
    %c0_11 = arith.constant 0 : index
    %9 = vector.load %arg5[%c0_10, %c0_11] : memref<1x64xf32, #tpu.memory_space<vmem>>, vector<1x64xf32>
    %10 = vector.broadcast %9 : vector<1x64xf32> to vector<16x64xf32>
    %11 = arith.addf %8, %10 : vector<16x64xf32>
    %c0_12 = arith.constant 0 : index
    %c0_13 = arith.constant 0 : index
    %12 = vector.load %arg7[%c0_12, %c0_13] : memref<16x64xf32, #tpu.memory_space<vmem>>, vector<16x64xf32>
    tpu.vector_store %arg7[%c0_12, %c0_13], %11 {strides = array<i32>} : memref<16x64xf32, #tpu.memory_space<vmem>>, vector<16x64xf32>,
    return
  }
  func.func @transform_0(%arg0: i32) -> (i32, i32) {
    %c0_i32 = arith.constant 0 : i32
    %c0_i32_0 = arith.constant 0 : i32
    return %arg0, %c0_i32 : i32, i32
  }
  func.func @transform_1(%arg0: i32) -> (i32, i32) {
    %c0_i32 = arith.constant 0 : i32
    %c0_i32_0 = arith.constant 0 : i32
    %c0_i32_1 = arith.constant 0 : i32
    return %c0_i32, %c0_i32_0 : i32, i32
  }
  func.func @transform_2(%arg0: i32) -> (i32, i32) {
    %c0_i32 = arith.constant 0 : i32
    %c0_i32_0 = arith.constant 0 : i32
    %c0_i32_1 = arith.constant 0 : i32
    return %c0_i32, %c0_i32_0 : i32, i32
  }
  func.func @transform_3(%arg0: i32) -> (i32, i32) {
    %c0_i32 = arith.constant 0 : i32
    %c0_i32_0 = arith.constant 0 : i32
    %c0_i32_1 = arith.constant 0 : i32
    return %c0_i32, %c0_i32_0 : i32, i32
  }
  func.func @transform_4(%arg0: i32) -> (i32, i32) {
    %c0_i32 = arith.constant 0 : i32
    %c0_i32_0 = arith.constant 0 : i32
    %c0_i32_1 = arith.constant 0 : i32
    return %c0_i32, %c0_i32_0 : i32, i32
  }
  func.func @transform_5(%arg0: i32) -> (i32, i32) {
    %c0_i32 = arith.constant 0 : i32
    %c0_i32_0 = arith.constant 0 : i32
    return %arg0, %c0_i32 : i32, i32
  }
  func.func @transform_6(%arg0: i32) -> (i32, i32) {
    %c0_i32 = arith.constant 0 : i32
    %c0_i32_0 = arith.constant 0 : i32
    return %arg0, %c0_i32 : i32, i32
  }
}

</mosaic_0001>

<bundles_post_ra>
// kernel: rnn_encoder_forward.4
= control target key start
LH: loop header
LB: loop body
LE: loop exit
PB: predicated region body
PF: predicated region fallthrough
CT: control target
= control target key end

     0   :  { %v187_v0 = vmov 0.0   ;;  %vm188_vm0 = vmmov 0   ;;  %vm45_vm1 = vcmask 130048   ;;  %vm90_vm2 = vcmask 523264   ;;  %s255_s1 = inlined_call_operand.vmem [shape: bf16[16,64], index: 1, kind: input, shape index: {}]   ;;  %s256_s2 = inlined_call_operand.vmem [shape: bf16[16,64], index: 2, kind: input, shape index: {}]   ;;  %s257_s0 = inlined_call_operand.vmem [shape: bf16[16,16], index: 0, kind: input, shape index: {}]   ;;  %s258_s3 = inlined_call_operand.vmem [shape: f32[1,64], index: 3, kind: input, shape index: {}]   ;;  %s259_s4 = inlined_call_operand.vmem [shape: f32[1,64], index: 4, kind: input, shape index: {}]   ;;  %s260_s5 = inlined_call_operand.vmem [shape: f32[16,64], index: 5, kind: output, shape index: {0}]   ;;  %s261_s6 = inlined_call_operand.vmem [shape: f32[16,64], index: 6, kind: output, shape index: {1}]  }
   0x1   :  { %170 = vmatprep.subr.bf16.mxu0 %v187_v0  ;;  %176 = vmatprep.subr.bf16.mxu1 %v187_v0  ;;  %v184_v1 = vld [vmem:[%s255_s1] sm:$0xff]  }
   0x2   :  { %v185_v2 = vld [vmem:[%s256_s2] sm:$0xff]   ;;  %172 = vmatprep.mubr.msk.bf16.mxu0 %vm188_vm0, %v187_v0  ;;  %178 = vmatprep.mubr.msk.bf16.mxu1 %vm188_vm0, %v187_v0 }
   0x3   :  { %171 = vmatpush3.bf16.msra.mxu0 %v184_v1  ;;  %v186_v3 = vld [vmem:[%s257_s0] sm:$0xff]   ;;  %177 = vmatpush3.bf16.msra.mxu1 %v185_v2 }
   0x4   :  { %v159_v4 = vld [vmem:[%s258_s3] ss:$0 sm:$0xff] }
   0x5   :  { %v163_v5 = vld [vmem:[%s259_s4] ss:$0 sm:$0xff] }
   0x6   :  { %173 = vmatmul.mubr.msk.bf16.vlgmr.msra.gmra.mrb[0].mxu0 %vm45_vm1, %v186_v3  ;;  %179 = vmatmul.mubr.msk.bf16.vlgmr.msra.gmra.mrb[0].mxu1 %vm45_vm1, %v186_v3 }
  0xd9   :  { %v83_v6 = vpop.f32.mrb[0].mxu0  ;;  %v142_v8 = vpop.f32.mrb[0].mxu1 }
  0xda   :  { %v84_v7 = vadd.f32 %v159_v4, %v83_v6  ;;  %v174_v9 = vpop.f32.mrb[1].mxu0  ;;  %v143_v10 = vadd.f32 %v163_v5, %v142_v8  ;;  %v180_v11 = vpop.f32.mrb[1].mxu1 }
  0xdb   :  { %v86_v12 = vpop.f32.mrb[2].mxu0  ;;  %v145_v14 = vpop.f32.mrb[2].mxu1 }
  0xdc   :  { %91 = vst.msk [vmem:[%s260_s5] sm:$0xff] %vm90_vm2, %v84_v7  ;;  %v87_v13 = vadd.f32 %v159_v4, %v86_v12  ;;  %v175_v15 = vpop.f32.mrb[3].mxu0  ;;  %149 = vst.msk [vmem:[%s261_s6] sm:$0xff] %vm90_vm2, %v143_v10  ;;  %v146_v16 = vadd.f32 %v163_v5, %v145_v14  ;;  %v181_v17 = vpop.f32.mrb[3].mxu1 }
  0xde   :  { %92 = vst.msk [vmem:[%s260_s5 + $0x8] sm:$0xff] %vm90_vm2, %v87_v13  ;;  %150 = vst.msk [vmem:[%s261_s6 + $0x8] sm:$0xff] %vm90_vm2, %v146_v16 }

// kernel: rnn_encoder_forward.6
= control target key start
LH: loop header
LB: loop body
LE: loop exit
PB: predicated region body
PF: predicated region fallthrough
CT: control target
= control target key end

     0   :  { %v213_v0 = vmov 0.0   ;;  %vm214_vm0 = vmmov 0   ;;  %vm53_vm1 = vcmask 261120   ;;  %vm98_vm2 = vcmask 523264   ;;  %s287_s1 = inlined_call_operand.vmem [shape: bf16[32,64], index: 1, kind: input, shape index: {}]   ;;  %s288_s2 = inlined_call_operand.vmem [shape: bf16[32,64], index: 2, kind: input, shape index: {}]   ;;  %s289_s0 = inlined_call_operand.vmem [shape: bf16[16,32], index: 0, kind: input, shape index: {}]   ;;  %s290_s3 = inlined_call_operand.vmem [shape: f32[1,64], index: 3, kind: input, shape index: {}]   ;;  %s291_s4 = inlined_call_operand.vmem [shape: f32[1,64], index: 4, kind: input, shape index: {}]   ;;  %s292_s5 = inlined_call_operand.vmem [shape: f32[16,64], index: 5, kind: output, shape index: {0}]   ;;  %s293_s6 = inlined_call_operand.vmem [shape: f32[16,64], index: 6, kind: output, shape index: {1}]  }
   0x1   :  { %190 = vmatprep.subr.bf16.mxu0 %v213_v0  ;;  %198 = vmatprep.subr.bf16.mxu1 %v213_v0  ;;  %v208_v1 = vld [vmem:[%s287_s1] sm:$0xff]   ;;  %v210_v3 = vld [vmem:[%s287_s1 + $0x8] sm:$0xff]  }
   0x2   :  { %v209_v2 = vld [vmem:[%s288_s2] sm:$0xff]   ;;  %194 = vmatprep.mubr.msk.bf16.mxu0 %vm214_vm0, %v213_v0  ;;  %202 = vmatprep.mubr.msk.bf16.mxu1 %vm214_vm0, %v213_v0  ;;  %v211_v4 = vld [vmem:[%s288_s2 + $0x8] sm:$0xff]  }
   0x3   :  { %191 = vmatpush3.bf16.msra.mxu0 %v208_v1  ;;  %199 = vmatpush3.bf16.msra.mxu1 %v209_v2  ;;  %v212_v5 = vld [vmem:[%s289_s0] sm:$0xff]  }
   0x4   :  { %192 = vmatprep.subr.bf16.mxu0 %v213_v0  ;;  %200 = vmatprep.subr.bf16.mxu1 %v213_v0  ;;  %v175_v6 = vld [vmem:[%s290_s3] ss:$0 sm:$0xff] }
   0x5   :  { %v180_v7 = vld [vmem:[%s291_s4] ss:$0 sm:$0xff] }
   0x7   :  { %193 = vmatpush3.bf16.msra.mxu0 %v210_v3  ;;  %201 = vmatpush3.bf16.msra.mxu1 %v211_v4 }
   0xa   :  { %195 = vmatmul.mubr.msk.bf16.vlgmr.msra.gmra.mrb[0].mxu0 %vm53_vm1, %v212_v5  ;;  %203 = vmatmul.mubr.msk.bf16.vlgmr.msra.gmra.mrb[0].mxu1 %vm53_vm1, %v212_v5 }
  0xdd   :  { %v91_v8 = vpop.f32.mrb[0].mxu0  ;;  %v158_v10 = vpop.f32.mrb[0].mxu1 }
  0xde   :  { %v92_v9 = vadd.f32 %v175_v6, %v91_v8  ;;  %v196_v11 = vpop.f32.mrb[1].mxu0  ;;  %v159_v12 = vadd.f32 %v180_v7, %v158_v10  ;;  %v204_v13 = vpop.f32.mrb[1].mxu1 }
  0xdf   :  { %v94_v14 = vpop.f32.mrb[2].mxu0  ;;  %v161_v16 = vpop.f32.mrb[2].mxu1 }
  0xe0   :  { %99 = vst.msk [vmem:[%s292_s5] sm:$0xff] %vm98_vm2, %v92_v9  ;;  %v95_v15 = vadd.f32 %v175_v6, %v94_v14  ;;  %v197_v17 = vpop.f32.mrb[3].mxu0  ;;  %165 = vst.msk [vmem:[%s293_s6] sm:$0xff] %vm98_vm2, %v159_v12  ;;  %v162_v18 = vadd.f32 %v180_v7, %v161_v16  ;;  %v205_v19 = vpop.f32.mrb[3].mxu1 }
  0xe2   :  { %100 = vst.msk [vmem:[%s292_s5 + $0x8] sm:$0xff] %vm98_vm2, %v95_v15  ;;  %166 = vst.msk [vmem:[%s293_s6 + $0x8] sm:$0xff] %vm98_vm2, %v162_v18 }

// kernel: rnn_encoder_forward.5
= control target key start
LH: loop header
LB: loop body
LE: loop exit
PB: predicated region body
PF: predicated region fallthrough
CT: control target
= control target key end

     0   :  { %vm65_vm0 = vcmask 123904   ;;  %v2116_v0 = vmov 0.0   ;;  %vm2117_vm1 = vmmov 0   ;;  %vm90_vm2 = vcmask 130048   ;;  %s2118_s9 = smov 16   ;;  %s2120_s14 = smov 80   ;;  %s2939_s3 = inlined_call_operand.vmem [shape: bf16[16,64], index: 3, kind: input, shape index: {}]   ;;  %s2940_s4 = inlined_call_operand.vmem [shape: bf16[16,64], index: 4, kind: input, shape index: {}]   ;;  %s2941_s1 = inlined_call_operand.vmem [shape: f32[8,2,64], index: 1, kind: input, shape index: {}]   ;;  %s2942_s2 = inlined_call_operand.vmem [shape: f32[8,2,64], index: 2, kind: input, shape index: {}]   ;;  %s2943_s0 = inlined_call_operand.vmem [shape: s32[2,1], index: 0, kind: input, shape index: {}]   ;;  %s2944_s5 = inlined_call_operand.vmem [shape: f32[8,2,16], index: 5, kind: output, shape index: {0}]   ;;  %s2945_s6 = inlined_call_operand.vmem [shape: f32[8,2,16], index: 6, kind: output, shape index: {1}]   ;;  %s2946_s8 = inlined_call_operand.vmem [shape: f32[2,2,16], index: 8, kind: output, shape index: {3}]   ;;  %s2947_s7 = inlined_call_operand.vmem [shape: f32[2,2,16], index: 7, kind: output, shape index: {2}]  }
   0x1   :  { %1866 = vmatprep.subr.bf16.mxu0 %v2116_v0  ;;  %v1972_v1 = vld [vmem:[%s2939_s3] sm:$0xff]   ;;  %1872 = vmatprep.subr.bf16.mxu1 %v2116_v0  ;;  %66 = vst.msk [vmem:[#allocation2] sm:$0x3] %vm65_vm0, %v2116_v0  ;;  %67 = vst.msk [vmem:[#allocation2 + $0x2] sm:$0x3] %vm65_vm0, %v2116_v0  ;;  %v2119_v21 = vmov 0  }
   0x2   :  { %68 = vst.msk [vmem:[#allocation2 + $0x4] sm:$0x3] %vm65_vm0, %v2116_v0  ;;  %69 = vst.msk [vmem:[#allocation2 + $0x6] sm:$0x3] %vm65_vm0, %v2116_v0  ;;  %v1973_v2 = vld [vmem:[%s2940_s4] sm:$0xff]   ;;  %1868 = vmatprep.mubr.msk.bf16.mxu0 %vm2117_vm1, %v2116_v0  ;;  %1874 = vmatprep.mubr.msk.bf16.mxu1 %vm2117_vm1, %v2116_v0  ;;  %s2121_s20 = smov 32  }
   0x3   :  { %1867 = vmatpush3.bf16.msra.mxu0 %v1972_v1  ;;  %1873 = vmatpush3.bf16.msra.mxu1 %v1973_v2  ;;  %v80_v9 = vld [vmem:[%s2941_s1] sm:$0x3]  ;;  %v1742_v10 = vld [vmem:[%s2942_s2 + $0xe] sm:$0x3]  ;;  %s2122_s21 = smov 96  }
   0x4   :  { %1878 = vmatprep.subr.bf16.mxu0 %v2116_v0  ;;  %1884 = vmatprep.subr.bf16.mxu1 %v2116_v0  ;;  %v2220_v30 = vld [vmem:[%s2943_s0] sm:$0x3]  ;;  %v1750_v2 = vld [vmem:[%s2941_s1 + $0x2] sm:$0x3] }
   0x5   :  { %1970 = vset.pattern.permute.xlu0 %v2119_v21  ;;  %1971 = vset.pattern.permute.xlu1 %v2119_v21  ;;  %vm1747_vm3 = vcmp.gt.s32.totalorder %v2220_v30, 0  ;;  %vm1748_vm4 = vcmp.gt.s32.totalorder %v2220_v30, 7  ;;  %v1974_v47 = vld [vmem:[%s2939_s3] sm:$0xff]   ;;  %vm1758_vm7 = vcmp.gt.s32.totalorder %v2220_v30, 1  ;;  %vm1759_vm8 = vcmp.gt.s32.totalorder %v2220_v30, 6 }
   0x6   :  { %v2225_v36 = vsel %vm1747_vm3, 1, %v2119_v21  ;;  %v2231_v38 = vsel %vm1748_vm4, 1, %v2119_v21  ;;  %v1975_v48 = vld [vmem:[%s2940_s4] sm:$0xff]   ;;  %vm1770_vm11 = vcmp.gt.s32.totalorder %v2220_v30, 2  ;;  %vm1771_vm12 = vcmp.gt.s32.totalorder %v2220_v30, 5 }
   0x7   :  { %vm1782_vm15 = vcmp.gt.s32.totalorder %v2220_v30, 3  ;;  %vm1783_vm3 = vcmp.gt.s32.totalorder %v2220_v30, 4 }
   0x8   :  { %v2191_v3 = vld [vmem:[#allocation2] sm:$0x3]  ;;  %v74_v5 = vld [vmem:[#allocation2 + $0x2] sm:$0x3] }
   0x9   :  { %v2193_v4 = vld [vmem:[#allocation2 + $0x4] sm:$0x3]  ;;  %v81_v6 = vpack.c.bf16 %v2191_v3, %v2191_v3  ;;  %198 = vrot.lane.b32.xlu1 %v74_v5, %s2118_s9  ;;  %v78_v8 = vld [vmem:[#allocation2 + $0x6] sm:$0x3] }
   0xa   :  { %v137_v7 = vpack.c.bf16 %v2193_v4, %v2193_v4 }
   0xb   :  { %1869 = vmatmul.mubr.msk.bf16.vlgmr.msra.gmra.mrb[0].mxu0 %vm90_vm2, %v81_v6 }
   0xc   :  { %1875 = vmatmul.mubr.msk.bf16.vlgmr.msra.gmra.mrb[0].mxu1 %vm90_vm2, %v137_v7  ;;  %1880 = vmatprep.mubr.msk.bf16.mxu0 %vm2117_vm1, %v2116_v0  ;;  %v1753_v7 = vld [vmem:[%s2942_s2 + $0xc] sm:$0x3] }
   0xd   :  { %1886 = vmatprep.mubr.msk.bf16.mxu1 %vm2117_vm1, %v2116_v0  ;;  %226 = vrot.lane.b32.xlu1 %v78_v8, %s2118_s9 }
   0xe   :  { %1879 = vmatpush3.bf16.msra.mxu0 %v1974_v47  ;;  %1885 = vmatpush3.bf16.msra.mxu1 %v1975_v48 }
   0xf   :  { %1890 = vmatprep.subr.bf16.mxu0 %v2116_v0  ;;  %1896 = vmatprep.subr.bf16.mxu1 %v2116_v0 }
  0x7b   :  { %v2234_v39 = vpop.permute.xlu1 %198 }
  0x7f   :  { %v2237_v41 = vpop.permute.xlu1 %226 }
  0xde   :  { %v128_v11 = vpop.f32.mrb[0].mxu0 }
  0xdf   :  { %v183_v12 = vpop.f32.mrb[0].mxu1  ;;  %v134_v13 = vadd.f32 %v128_v11, %v80_v9  ;;  %v1870_v14 = vpop.f32.mrb[1].mxu0 }
  0xe0   :  { %v189_v15 = vadd.f32 %v1742_v10, %v183_v12  ;;  %v1876_v16 = vpop.f32.mrb[1].mxu1  ;;  %v131_v17 = vpop.f32.mrb[2].mxu0 }
  0xe1   :  { %v186_v18 = vpop.f32.mrb[2].mxu1  ;;  %1988 = vtanh.f32 %v134_v13  ;;  %v1871_v19 = vpop.f32.mrb[3].mxu0  ;;  %v1745_v24 = vmul.f32 -1.442695, %v134_v13 }
  0xe2   :  { %v1877_v20 = vpop.f32.mrb[3].mxu1  ;;  %1990 = vtanh.f32 %v189_v15  ;;  %v1746_v25 = vmul.f32 -1.442695, %v189_v15 }
  0xe3   :  { %1992 = vpow2.f32 %v1745_v24 }
  0xe4   :  { %1994 = vpow2.f32 %v1746_v25 }
  0xeb   :  { %v1989_v22 = vpop.eup %1988 }
  0xec   :  { %203 = vrot.lane.b32.xlu0 %v1989_v22, %s2120_s14  ;;  %v1991_v23 = vpop.eup %1990 }
  0xed   :  { %v1993_v26 = vpop.eup %1992 }
  0xee   :  { %v193_v27 = vadd.f32 1.0, %v1993_v26  ;;  %v1995_v28 = vpop.eup %1994 }
  0xef   :  { %v221_v29 = vadd.f32 1.0, %v1995_v28  ;;  %v2301_v28 = vsel %vm1758_vm7, 1, %v2119_v21 }
  0xf0   :  { %231 = vrot.lane.b32.xlu0 %v1991_v23, %s2120_s14  ;;  %1996 = vrcp.f32 %v193_v27 }
  0xf1   :  { %1998 = vrcp.f32 %v221_v29 }
  0xfa   :  { %v1997_v31 = vpop.eup %1996 }
  0xfb   :  { %v1999_v34 = vpop.eup %1998  ;;  %v201_v40 = vmul.f32 %v1997_v31, %v2234_v39 }
  0xfc   :  { %v229_v44 = vmul.f32 %v1999_v34, %v2237_v41 }
 0x15e   :  { %v204_v32 = vpop.permute.xlu0 %203 }
 0x15f   :  { %v206_v33 = vmul.f32 %v1997_v31, %v204_v32 }
 0x161   :  { %208 = vrot.lane.b32.xlu0 %v206_v33, %s2118_s9 }
 0x162   :  { %v232_v35 = vpop.permute.xlu0 %231 }
 0x163   :  { %v234_v37 = vmul.f32 %v1999_v34, %v232_v35 }
 0x165   :  { %236 = vrot.lane.b32.xlu1 %v234_v37, %s2118_s9  ;;  %252 = vperm.xlu0 %1970, %v2225_v36  }
 0x169   :  { %263 = vperm.xlu1 %1971, %v2231_v38  }
 0x1d3   :  { %v209_v42 = vpop.permute.xlu0 %208 }
 0x1d4   :  { %v2239_v43 = vadd.f32 %v209_v42, %v201_v40 }
 0x1d6   :  { %2000 = vtanh.f32 %v2239_v43 }
 0x1d7   :  { %v237_v45 = vpop.permute.xlu1 %236 }
 0x1d8   :  { %v2243_v46 = vadd.f32 %v237_v45, %v229_v44 }
 0x1da   :  { %2002 = vtanh.f32 %v2243_v46 }
 0x1e0   :  { %v2001_v49 = vpop.eup %2000 }
 0x1e1   :  { %214 = vrot.lane.b32.xlu1 %v2001_v49, %s2118_s9 }
 0x1e4   :  { %v2003_v50 = vpop.eup %2002  ;;  %v2260_v52 = vpop.permute.xlu0 %252 }
 0x1e5   :  { %256 = vrot.lane.b32.xlu1 %v2191_v3, %s2121_s20  ;;  %242 = vrot.lane.b32.xlu0 %v2003_v50, %s2118_s9  ;;  %vm254_vm5 = vcmp.eq.s32.totalorder %v2260_v52, 1 }
 0x1e6   :  { %v2314_v32 = vsel %vm254_vm5, %v2239_v43, %v2234_v39  ;;  %v1976_v39 = vld [vmem:[%s2939_s3] sm:$0xff]  }
 0x1e7   :  { %v1977_v43 = vld [vmem:[%s2940_s4] sm:$0xff]  }
 0x1e8   :  { %v2258_v51 = vpop.permute.xlu1 %263 }
 0x1e9   :  { %267 = vrot.lane.b32.xlu0 %v2193_v4, %s2121_s20  ;;  %vm265_vm6 = vcmp.eq.s32.totalorder %v2258_v51, 1 }
 0x1ea   :  { %v2323_v37 = vsel %vm265_vm6, %v2243_v46, %v2237_v41 }
 0x253   :  { %v215_v53 = vpop.permute.xlu1 %214 }
 0x254   :  { %v2262_v54 = vmul.f32 %v1997_v31, %v215_v53  ;;  %v2307_v31 = vsel %vm1759_vm8, 1, %v2119_v21 }
 0x257   :  { %v257_v55 = vpop.permute.xlu1 %256  ;;  %v243_v56 = vpop.permute.xlu0 %242 }
 0x258   :  { %v2268_v57 = vsel %vm254_vm5, %v2262_v54, %v257_v55  ;;  %v2272_v59 = vmul.f32 %v1999_v34, %v243_v56 }
 0x259   :  { %v290_v58 = vpack.c.bf16 %v2268_v57, %v2268_v57 }
 0x25b   :  { %294 = vrot.lane.b32.xlu1 %v290_v58, %s2122_s21  ;;  %v268_v60 = vpop.permute.xlu0 %267 }
 0x25c   :  { %v2279_v61 = vsel %vm265_vm6, %v2272_v59, %v268_v60 }
 0x25d   :  { %v348_v62 = vpack.c.bf16 %v2279_v61, %v2279_v61 }
 0x25f   :  { %352 = vrot.lane.b32.xlu0 %v348_v62, %s2122_s21 }
 0x2cd   :  { %v295_v63 = vpop.permute.xlu1 %294 }
 0x2ce   :  { %1881 = vmatmul.mubr.msk.bf16.vlgmr.msra.gmra.mrb[4].mxu0 %vm90_vm2, %v295_v63 }
 0x2cf   :  { %1892 = vmatprep.mubr.msk.bf16.mxu0 %vm2117_vm1, %v2116_v0  ;;  %1891 = vmatpush3.bf16.msra.mxu0 %v1976_v39 }
 0x2d0   :  { %1902 = vmatprep.subr.bf16.mxu0 %v2116_v0 }
 0x2d1   :  { %v353_v1 = vpop.permute.xlu0 %352 }
 0x2d2   :  { %1887 = vmatmul.mubr.msk.bf16.vlgmr.msra.gmra.mrb[4].mxu1 %vm90_vm2, %v353_v1 }
 0x2d3   :  { %1898 = vmatprep.mubr.msk.bf16.mxu1 %vm2117_vm1, %v2116_v0  ;;  %1897 = vmatpush3.bf16.msra.mxu1 %v1977_v43 }
 0x2d4   :  { %1908 = vmatprep.subr.bf16.mxu1 %v2116_v0 }
 0x3a1   :  { %v339_v3 = vpop.f32.mrb[4].mxu0 }
 0x3a2   :  { %v345_v4 = vadd.f32 %v1750_v2, %v339_v3  ;;  %v1882_v5 = vpop.f32.mrb[5].mxu0 }
 0x3a3   :  { %v342_v6 = vpop.f32.mrb[6].mxu0 }
 0x3a4   :  { %2004 = vtanh.f32 %v345_v4  ;;  %v1883_v8 = vpop.f32.mrb[7].mxu0  ;;  %v1756_v16 = vmul.f32 -1.442695, %v345_v4  ;;  %v1765_v4 = vld [vmem:[%s2942_s2 + $0xa] sm:$0x3] }
 0x3a5   :  { %v397_v9 = vpop.f32.mrb[4].mxu1 }
 0x3a6   :  { %v403_v10 = vadd.f32 %v1753_v7, %v397_v9  ;;  %v1888_v11 = vpop.f32.mrb[5].mxu1 }
 0x3a7   :  { %v400_v12 = vpop.f32.mrb[6].mxu1 }
 0x3a8   :  { %2006 = vtanh.f32 %v403_v10  ;;  %v1889_v13 = vpop.f32.mrb[7].mxu1  ;;  %v1757_v17 = vmul.f32 -1.442695, %v403_v10 }
 0x3a9   :  { %2008 = vpow2.f32 %v1756_v16 }
 0x3aa   :  { %2010 = vpow2.f32 %v1757_v17 }
 0x3ae   :  { %v2005_v14 = vpop.eup %2004 }
 0x3af   :  { %413 = vrot.lane.b32.xlu1 %v2005_v14, %s2120_s14 }
 0x3b2   :  { %v2007_v15 = vpop.eup %2006 }
 0x3b3   :  { %437 = vrot.lane.b32.xlu0 %v2007_v15, %s2120_s14  ;;  %v2009_v18 = vpop.eup %2008 }
 0x3b4   :  { %v407_v19 = vadd.f32 1.0, %v2009_v18  ;;  %v2011_v20 = vpop.eup %2010 }
 0x3b5   :  { %v431_v22 = vadd.f32 1.0, %v2011_v20 }
 0x3b6   :  { %2012 = vrcp.f32 %v407_v19 }
 0x3b7   :  { %2014 = vrcp.f32 %v431_v22 }
 0x3c0   :  { %v2013_v23 = vpop.eup %2012 }
 0x3c1   :  { %v2015_v26 = vpop.eup %2014  ;;  %v411_v33 = vmul.f32 %v2013_v23, %v2314_v32 }
 0x3c2   :  { %v435_v40 = vmul.f32 %v2015_v26, %v2323_v37 }
 0x421   :  { %v414_v24 = vpop.permute.xlu1 %413 }
 0x422   :  { %v416_v25 = vmul.f32 %v2013_v23, %v414_v24 }
 0x424   :  { %418 = vrot.lane.b32.xlu1 %v416_v25, %s2118_s9  ;;  %v2385_v25 = vsel %vm1770_vm11, 1, %v2119_v21 }
 0x425   :  { %v438_v27 = vpop.permute.xlu0 %437 }
 0x426   :  { %v440_v29 = vmul.f32 %v2015_v26, %v438_v27  ;;  %v2391_v27 = vsel %vm1771_vm12, 1, %v2119_v21 }
 0x428   :  { %458 = vperm.xlu1 %1971, %v2301_v28   ;;  %442 = vrot.lane.b32.xlu0 %v440_v29, %s2118_s9 }
 0x42c   :  { %465 = vperm.xlu0 %1970, %v2307_v31  }
 0x496   :  { %v419_v34 = vpop.permute.xlu1 %418 }
 0x497   :  { %v2317_v35 = vadd.f32 %v419_v34, %v411_v33 }
 0x499   :  { %2016 = vtanh.f32 %v2317_v35 }
 0x49a   :  { %v443_v42 = vpop.permute.xlu0 %442 }
 0x49b   :  { %v2327_v44 = vadd.f32 %v443_v42, %v435_v40 }
 0x49d   :  { %2018 = vtanh.f32 %v2327_v44 }
 0x4a3   :  { %v2017_v41 = vpop.eup %2016 }
 0x4a4   :  { %424 = vrot.lane.b32.xlu1 %v2017_v41, %s2118_s9 }
 0x4a7   :  { %v2019_v45 = vpop.eup %2018  ;;  %v2340_v46 = vpop.permute.xlu1 %458 }
 0x4a8   :  { %448 = vrot.lane.b32.xlu0 %v2019_v45, %s2118_s9  ;;  %vm460_vm9 = vcmp.eq.s32.totalorder %v2340_v46, 1 }
 0x4a9   :  { %v2398_v29 = vsel %vm460_vm9, %v2317_v35, %v2314_v32  ;;  %v1978_v32 = vld [vmem:[%s2939_s3] sm:$0xff]  }
 0x4aa   :  { %v1979_v35 = vld [vmem:[%s2940_s4] sm:$0xff]  }
 0x4ab   :  { %v2342_v47 = vpop.permute.xlu0 %465 }
 0x4ac   :  { %vm467_vm10 = vcmp.eq.s32.totalorder %v2342_v47, 1 }
 0x4ad   :  { %v2407_v42 = vsel %vm467_vm10, %v2327_v44, %v2323_v37 }
 0x516   :  { %v425_v48 = vpop.permute.xlu1 %424 }
 0x517   :  { %v2344_v49 = vmul.f32 %v2013_v23, %v425_v48 }
 0x519   :  { %v2351_v50 = vsel %vm460_vm9, %v2344_v49, %v2268_v57 }
 0x51a   :  { %v449_v53 = vpop.permute.xlu0 %448  ;;  %v488_v55 = vpack.c.bf16 %v2351_v50, %v2351_v50 }
 0x51b   :  { %v2355_v56 = vmul.f32 %v2015_v26, %v449_v53 }
 0x51c   :  { %492 = vrot.lane.b32.xlu1 %v488_v55, %s2122_s21 }
 0x51d   :  { %v2363_v58 = vsel %vm467_vm10, %v2355_v56, %v2279_v61  ;;  %v1762_v61 = vld [vmem:[%s2941_s1 + $0x4] sm:$0x3] }
 0x51e   :  { %v546_v57 = vpack.c.bf16 %v2363_v58, %v2363_v58 }
 0x520   :  { %550 = vrot.lane.b32.xlu0 %v546_v57, %s2122_s21 }
 0x58e   :  { %v493_v60 = vpop.permute.xlu1 %492 }
 0x58f   :  { %1893 = vmatmul.mubr.msk.bf16.vlgmr.msra.gmra.mrb[8].mxu0 %vm90_vm2, %v493_v60 }
 0x590   :  { %1904 = vmatprep.mubr.msk.bf16.mxu0 %vm2117_vm1, %v2116_v0  ;;  %1903 = vmatpush3.bf16.msra.mxu0 %v1978_v32  ;;  %v2475_v32 = vsel %vm1783_vm3, 1, %v2119_v21 }
 0x591   :  { %1914 = vmatprep.subr.bf16.mxu0 %v2116_v0 }
 0x592   :  { %v551_v62 = vpop.permute.xlu0 %550 }
 0x593   :  { %1899 = vmatmul.mubr.msk.bf16.vlgmr.msra.gmra.mrb[8].mxu1 %vm90_vm2, %v551_v62 }
 0x594   :  { %1910 = vmatprep.mubr.msk.bf16.mxu1 %vm2117_vm1, %v2116_v0  ;;  %1909 = vmatpush3.bf16.msra.mxu1 %v1979_v35 }
 0x595   :  { %1920 = vmatprep.subr.bf16.mxu1 %v2116_v0 }
 0x662   :  { %v537_v63 = vpop.f32.mrb[8].mxu0 }
 0x663   :  { %v543_v1 = vadd.f32 %v1762_v61, %v537_v63  ;;  %v1894_v2 = vpop.f32.mrb[9].mxu0 }
 0x664   :  { %v540_v3 = vpop.f32.mrb[10].mxu0 }
 0x665   :  { %2020 = vtanh.f32 %v543_v1  ;;  %v1895_v5 = vpop.f32.mrb[11].mxu0  ;;  %v1768_v13 = vmul.f32 -1.442695, %v543_v1 }
 0x666   :  { %v595_v6 = vpop.f32.mrb[8].mxu1 }
 0x667   :  { %v601_v7 = vadd.f32 %v1765_v4, %v595_v6  ;;  %v1900_v8 = vpop.f32.mrb[9].mxu1 }
 0x668   :  { %v598_v9 = vpop.f32.mrb[10].mxu1 }
 0x669   :  { %2022 = vtanh.f32 %v601_v7  ;;  %v1901_v10 = vpop.f32.mrb[11].mxu1  ;;  %v1769_v14 = vmul.f32 -1.442695, %v601_v7  ;;  %v1777_v7 = vld [vmem:[%s2942_s2 + $0x8] sm:$0x3] }
 0x66a   :  { %2024 = vpow2.f32 %v1768_v13 }
 0x66b   :  { %2026 = vpow2.f32 %v1769_v14 }
 0x66f   :  { %v2021_v11 = vpop.eup %2020 }
 0x670   :  { %611 = vrot.lane.b32.xlu1 %v2021_v11, %s2120_s14 }
 0x673   :  { %v2023_v12 = vpop.eup %2022 }
 0x674   :  { %635 = vrot.lane.b32.xlu0 %v2023_v12, %s2120_s14  ;;  %v2025_v15 = vpop.eup %2024 }
 0x675   :  { %v605_v16 = vadd.f32 1.0, %v2025_v15  ;;  %v2027_v17 = vpop.eup %2026 }
 0x676   :  { %v629_v18 = vadd.f32 1.0, %v2027_v17 }
 0x677   :  { %2028 = vrcp.f32 %v605_v16 }
 0x678   :  { %2030 = vrcp.f32 %v629_v18 }
 0x681   :  { %v2029_v19 = vpop.eup %2028 }
 0x682   :  { %v2031_v23 = vpop.eup %2030  ;;  %v609_v33 = vmul.f32 %v2029_v19, %v2398_v29 }
 0x683   :  { %v633_v39 = vmul.f32 %v2031_v23, %v2407_v42 }
 0x6e2   :  { %v612_v20 = vpop.permute.xlu1 %611 }
 0x6e3   :  { %v614_v22 = vmul.f32 %v2029_v19, %v612_v20 }
 0x6e5   :  { %616 = vrot.lane.b32.xlu1 %v614_v22, %s2118_s9 }
 0x6e6   :  { %v636_v24 = vpop.permute.xlu0 %635 }
 0x6e7   :  { %v638_v26 = vmul.f32 %v2031_v23, %v636_v24 }
 0x6e9   :  { %656 = vperm.xlu1 %1971, %v2385_v25   ;;  %640 = vrot.lane.b32.xlu0 %v638_v26, %s2118_s9 }
 0x6ed   :  { %663 = vperm.xlu0 %1970, %v2391_v27  }
 0x757   :  { %v617_v34 = vpop.permute.xlu1 %616 }
 0x758   :  { %v2401_v40 = vadd.f32 %v617_v34, %v609_v33 }
 0x75a   :  { %2032 = vtanh.f32 %v2401_v40 }
 0x75b   :  { %v641_v43 = vpop.permute.xlu0 %640 }
 0x75c   :  { %v2411_v41 = vadd.f32 %v641_v43, %v633_v39  ;;  %v2469_v39 = vsel %vm1782_vm15, 1, %v2119_v21 }
 0x75e   :  { %2034 = vtanh.f32 %v2411_v41 }
 0x764   :  { %v2033_v37 = vpop.eup %2032 }
 0x765   :  { %622 = vrot.lane.b32.xlu1 %v2033_v37, %s2118_s9 }
 0x768   :  { %v2035_v44 = vpop.eup %2034  ;;  %v2424_v45 = vpop.permute.xlu1 %656 }
 0x769   :  { %646 = vrot.lane.b32.xlu0 %v2035_v44, %s2118_s9  ;;  %vm658_vm13 = vcmp.eq.s32.totalorder %v2424_v45, 1 }
 0x76a   :  { %v2482_v35 = vsel %vm658_vm13, %v2401_v40, %v2398_v29  ;;  %v1980_v29 = vld [vmem:[%s2939_s3] sm:$0xff]  }
 0x76b   :  { %v1981_v40 = vld [vmem:[%s2940_s4] sm:$0xff]  }
 0x76c   :  { %v2426_v48 = vpop.permute.xlu0 %663 }
 0x76d   :  { %vm665_vm14 = vcmp.eq.s32.totalorder %v2426_v48, 1 }
 0x76e   :  { %v2491_v30 = vsel %vm665_vm14, %v2411_v41, %v2407_v42 }
 0x7d7   :  { %v623_v53 = vpop.permute.xlu1 %622 }
 0x7d8   :  { %v2428_v55 = vmul.f32 %v2029_v19, %v623_v53 }
 0x7da   :  { %v2435_v57 = vsel %vm658_vm13, %v2428_v55, %v2351_v50  ;;  %v668_v52 = vsel %vm658_vm13, %v2428_v55, 0.0 }
 0x7db   :  { %v647_v60 = vpop.permute.xlu0 %646  ;;  %v686_v62 = vpack.c.bf16 %v2435_v57, %v2435_v57 }
 0x7dc   :  { %v2439_v61 = vmul.f32 %v2031_v23, %v647_v60 }
 0x7dd   :  { %690 = vrot.lane.b32.xlu1 %v686_v62, %s2122_s21 }
 0x7de   :  { %v2447_v63 = vsel %vm665_vm14, %v2439_v61, %v2363_v58  ;;  %v1774_v58 = vld [vmem:[%s2941_s1 + $0x6] sm:$0x3] }
 0x7df   :  { %v744_v50 = vpack.c.bf16 %v2447_v63, %v2447_v63 }
 0x7e1   :  { %748 = vrot.lane.b32.xlu0 %v744_v50, %s2122_s21 }
 0x84f   :  { %v691_v1 = vpop.permute.xlu1 %690 }
 0x850   :  { %1905 = vmatmul.mubr.msk.bf16.vlgmr.msra.gmra.mrb[12].mxu0 %vm90_vm2, %v691_v1 }
 0x851   :  { %1916 = vmatprep.mubr.msk.bf16.mxu0 %vm2117_vm1, %v2116_v0  ;;  %1915 = vmatpush3.bf16.msra.mxu0 %v1980_v29 }
 0x852   :  { %1926 = vmatprep.subr.bf16.mxu0 %v2116_v0 }
 0x853   :  { %v749_v2 = vpop.permute.xlu0 %748 }
 0x854   :  { %1911 = vmatmul.mubr.msk.bf16.vlgmr.msra.gmra.mrb[12].mxu1 %vm90_vm2, %v749_v2 }
 0x855   :  { %1922 = vmatprep.mubr.msk.bf16.mxu1 %vm2117_vm1, %v2116_v0  ;;  %1921 = vmatpush3.bf16.msra.mxu1 %v1981_v40 }
 0x856   :  { %1932 = vmatprep.subr.bf16.mxu1 %v2116_v0 }
 0x923   :  { %v735_v3 = vpop.f32.mrb[12].mxu0 }
 0x924   :  { %v741_v4 = vadd.f32 %v1774_v58, %v735_v3  ;;  %v1906_v5 = vpop.f32.mrb[13].mxu0 }
 0x925   :  { %v738_v6 = vpop.f32.mrb[14].mxu0 }
 0x926   :  { %2036 = vtanh.f32 %v741_v4  ;;  %v1907_v8 = vpop.f32.mrb[15].mxu0  ;;  %v1780_v16 = vmul.f32 -1.442695, %v741_v4 }
 0x927   :  { %v793_v9 = vpop.f32.mrb[12].mxu1 }
 0x928   :  { %v799_v10 = vadd.f32 %v1777_v7, %v793_v9  ;;  %v1912_v11 = vpop.f32.mrb[13].mxu1 }
 0x929   :  { %v796_v12 = vpop.f32.mrb[14].mxu1 }
 0x92a   :  { %2038 = vtanh.f32 %v799_v10  ;;  %v1913_v13 = vpop.f32.mrb[15].mxu1  ;;  %v1781_v17 = vmul.f32 -1.442695, %v799_v10 }
 0x92b   :  { %2040 = vpow2.f32 %v1780_v16 }
 0x92c   :  { %2042 = vpow2.f32 %v1781_v17 }
 0x930   :  { %v2037_v14 = vpop.eup %2036 }
 0x931   :  { %809 = vrot.lane.b32.xlu1 %v2037_v14, %s2120_s14  ;;  %v1789_v14 = vld [vmem:[%s2942_s2 + $0x6] sm:$0x3] }
 0x934   :  { %v2039_v15 = vpop.eup %2038 }
 0x935   :  { %833 = vrot.lane.b32.xlu0 %v2039_v15, %s2120_s14  ;;  %v2041_v18 = vpop.eup %2040 }
 0x936   :  { %v803_v19 = vadd.f32 1.0, %v2041_v18  ;;  %v2043_v20 = vpop.eup %2042 }
 0x937   :  { %v827_v22 = vadd.f32 1.0, %v2043_v20 }
 0x938   :  { %2044 = vrcp.f32 %v803_v19 }
 0x939   :  { %2046 = vrcp.f32 %v827_v22 }
 0x942   :  { %v2045_v23 = vpop.eup %2044 }
 0x943   :  { %v2047_v33 = vpop.eup %2046  ;;  %v807_v37 = vmul.f32 %v2045_v23, %v2482_v35 }
 0x944   :  { %v831_v21 = vmul.f32 %v2047_v33, %v2491_v30 }
 0x9a3   :  { %v810_v24 = vpop.permute.xlu1 %809 }
 0x9a4   :  { %v812_v26 = vmul.f32 %v2045_v23, %v810_v24 }
 0x9a6   :  { %814 = vrot.lane.b32.xlu1 %v812_v26, %s2118_s9 }
 0x9a7   :  { %v834_v34 = vpop.permute.xlu0 %833 }
 0x9a8   :  { %v836_v43 = vmul.f32 %v2047_v33, %v834_v34 }
 0x9aa   :  { %854 = vperm.xlu1 %1971, %v2469_v39   ;;  %838 = vrot.lane.b32.xlu0 %v836_v43, %s2118_s9 }
 0x9ae   :  { %861 = vperm.xlu0 %1970, %v2475_v32  }
 0xa18   :  { %v815_v44 = vpop.permute.xlu1 %814 }
 0xa19   :  { %v2485_v53 = vadd.f32 %v815_v44, %v807_v37 }
 0xa1b   :  { %2048 = vtanh.f32 %v2485_v53 }
 0xa1c   :  { %v839_v60 = vpop.permute.xlu0 %838 }
 0xa1d   :  { %v2495_v62 = vadd.f32 %v839_v60, %v831_v21 }
 0xa1f   :  { %2050 = vtanh.f32 %v2495_v62 }
 0xa25   :  { %v2049_v42 = vpop.eup %2048 }
 0xa26   :  { %820 = vrot.lane.b32.xlu1 %v2049_v42, %s2118_s9 }
 0xa29   :  { %v2051_v41 = vpop.eup %2050  ;;  %v2508_v50 = vpop.permute.xlu1 %854 }
 0xa2a   :  { %844 = vrot.lane.b32.xlu0 %v2051_v41, %s2118_s9  ;;  %vm856_vm4 = vcmp.eq.s32.totalorder %v2508_v50, 1 }
 0xa2b   :  { %v2558_v41 = vsel %vm856_vm4, %v2485_v53, %v2482_v35  ;;  %v1982_v35 = vld [vmem:[%s2939_s3] sm:$0xff]  }
 0xa2c   :  { %v1983_v53 = vld [vmem:[%s2940_s4] sm:$0xff]  }
 0xa2d   :  { %v2510_v1 = vpop.permute.xlu0 %861 }
 0xa2e   :  { %vm863_vm7 = vcmp.eq.s32.totalorder %v2510_v1, 1 }
 0xa98   :  { %v821_v2 = vpop.permute.xlu1 %820 }
 0xa99   :  { %v2512_v58 = vmul.f32 %v2045_v23, %v821_v2 }
 0xa9b   :  { %v2519_v3 = vsel %vm856_vm4, %v2512_v58, %v2435_v57  ;;  %v866_v51 = vsel %vm856_vm4, %v2512_v58, 0.0 }
 0xa9c   :  { %v845_v4 = vpop.permute.xlu0 %844  ;;  %v884_v5 = vpack.c.bf16 %v2519_v3, %v2519_v3 }
 0xa9d   :  { %v2523_v6 = vmul.f32 %v2047_v33, %v845_v4 }
 0xa9e   :  { %888 = vrot.lane.b32.xlu1 %v884_v5, %s2122_s21 }
 0xa9f   :  { %v2531_v7 = vsel %vm863_vm7, %v2523_v6, %v2447_v63  ;;  %v1786_v63 = vld [vmem:[%s2941_s1 + $0x8] sm:$0x3]  ;;  %v873_v47 = vsel %vm863_vm7, %v2523_v6, 0.0 }
 0xaa0   :  { %v942_v57 = vpack.c.bf16 %v2531_v7, %v2531_v7 }
 0xaa2   :  { %946 = vrot.lane.b32.xlu0 %v942_v57, %s2122_s21 }
 0xb10   :  { %v889_v8 = vpop.permute.xlu1 %888 }
 0xb11   :  { %1917 = vmatmul.mubr.msk.bf16.vlgmr.msra.gmra.mrb[16].mxu0 %vm90_vm2, %v889_v8 }
 0xb12   :  { %1928 = vmatprep.mubr.msk.bf16.mxu0 %vm2117_vm1, %v2116_v0  ;;  %1927 = vmatpush3.bf16.msra.mxu0 %v1982_v35 }
 0xb13   :  { %1938 = vmatprep.subr.bf16.mxu0 %v2116_v0 }
 0xb14   :  { %v947_v9 = vpop.permute.xlu0 %946 }
 0xb15   :  { %1923 = vmatmul.mubr.msk.bf16.vlgmr.msra.gmra.mrb[16].mxu1 %vm90_vm2, %v947_v9 }
 0xb16   :  { %1934 = vmatprep.mubr.msk.bf16.mxu1 %vm2117_vm1, %v2116_v0  ;;  %1933 = vmatpush3.bf16.msra.mxu1 %v1983_v53 }
 0xb17   :  { %1944 = vmatprep.subr.bf16.mxu1 %v2116_v0 }
 0xbe4   :  { %v933_v10 = vpop.f32.mrb[16].mxu0 }
 0xbe5   :  { %v939_v11 = vadd.f32 %v1786_v63, %v933_v10  ;;  %v1918_v12 = vpop.f32.mrb[17].mxu0 }
 0xbe6   :  { %v936_v13 = vpop.f32.mrb[18].mxu0 }
 0xbe7   :  { %2052 = vtanh.f32 %v939_v11  ;;  %v1919_v15 = vpop.f32.mrb[19].mxu0  ;;  %v1792_v24 = vmul.f32 -1.442695, %v939_v11 }
 0xbe8   :  { %v991_v16 = vpop.f32.mrb[16].mxu1 }
 0xbe9   :  { %v997_v17 = vadd.f32 %v1789_v14, %v991_v16  ;;  %v1924_v18 = vpop.f32.mrb[17].mxu1 }
 0xbea   :  { %v994_v19 = vpop.f32.mrb[18].mxu1 }
 0xbeb   :  { %2054 = vtanh.f32 %v997_v17  ;;  %v1925_v20 = vpop.f32.mrb[19].mxu1  ;;  %v1793_v26 = vmul.f32 -1.442695, %v997_v17 }
 0xbec   :  { %2056 = vpow2.f32 %v1792_v24  ;;  %v1801_v24 = vld [vmem:[%s2942_s2 + $0x4] sm:$0x3] }
 0xbed   :  { %2058 = vpow2.f32 %v1793_v26 }
 0xbf1   :  { %v2053_v22 = vpop.eup %2052 }
 0xbf2   :  { %1007 = vrot.lane.b32.xlu1 %v2053_v22, %s2120_s14 }
 0xbf5   :  { %v2055_v23 = vpop.eup %2054 }
 0xbf6   :  { %1031 = vrot.lane.b32.xlu0 %v2055_v23, %s2120_s14  ;;  %v2057_v33 = vpop.eup %2056 }
 0xbf7   :  { %v1001_v34 = vadd.f32 1.0, %v2057_v33  ;;  %v2059_v43 = vpop.eup %2058 }
 0xbf8   :  { %v1025_v37 = vadd.f32 1.0, %v2059_v43 }
 0xbf9   :  { %2060 = vrcp.f32 %v1001_v34 }
 0xbfa   :  { %2062 = vrcp.f32 %v1025_v37 }
 0xc03   :  { %v2061_v44 = vpop.eup %2060 }
 0xc04   :  { %v2063_v29 = vpop.eup %2062  ;;  %v1005_v2 = vmul.f32 %v2061_v44, %v2558_v41 }
 0xc64   :  { %v1008_v21 = vpop.permute.xlu1 %1007 }
 0xc65   :  { %v1010_v60 = vmul.f32 %v2061_v44, %v1008_v21 }
 0xc67   :  { %1012 = vrot.lane.b32.xlu1 %v1010_v60, %s2118_s9 }
 0xc68   :  { %v1032_v40 = vpop.permute.xlu0 %1031 }
 0xc69   :  { %v1034_v42 = vmul.f32 %v2063_v29, %v1032_v40 }
 0xc6b   :  { %1052 = vperm.xlu1 %1971, %v2475_v32   ;;  %1036 = vrot.lane.b32.xlu0 %v1034_v42, %s2118_s9  ;;  %v2567_v32 = vsel %vm863_vm7, %v2495_v62, %v2491_v30 }
 0xc6f   :  { %1059 = vperm.xlu0 %1970, %v2469_v39   ;;  %v1029_v39 = vmul.f32 %v2063_v29, %v2567_v32 }
 0xcd9   :  { %v1013_v4 = vpop.permute.xlu1 %1012 }
 0xcda   :  { %v2561_v5 = vadd.f32 %v1013_v4, %v1005_v2 }
 0xcdc   :  { %2064 = vtanh.f32 %v2561_v5 }
 0xcdd   :  { %v1037_v57 = vpop.permute.xlu0 %1036 }
 0xcde   :  { %v2571_v8 = vadd.f32 %v1037_v57, %v1029_v39 }
 0xce0   :  { %2066 = vtanh.f32 %v2571_v8 }
 0xce6   :  { %v2065_v30 = vpop.eup %2064 }
 0xce7   :  { %1018 = vrot.lane.b32.xlu1 %v2065_v30, %s2118_s9 }
 0xcea   :  { %v2067_v62 = vpop.eup %2066  ;;  %v2584_v9 = vpop.permute.xlu1 %1052 }
 0xceb   :  { %1042 = vrot.lane.b32.xlu0 %v2067_v62, %s2118_s9  ;;  %vm1054_vm8 = vcmp.eq.s32.totalorder %v2584_v9, 1 }
 0xcee   :  { %v2586_v63 = vpop.permute.xlu0 %1059 }
 0xcef   :  { %vm1061_vm11 = vcmp.eq.s32.totalorder %v2586_v63, 1 }
 0xd59   :  { %v1019_v10 = vpop.permute.xlu1 %1018 }
 0xd5a   :  { %v2588_v11 = vmul.f32 %v2061_v44, %v1019_v10 }
 0xd5c   :  { %v2595_v12 = vsel %vm1054_vm8, %v2588_v11, %v2519_v3  ;;  %v1064_v46 = vsel %vm1054_vm8, %v2588_v11, 0.0 }
 0xd5d   :  { %v1043_v13 = vpop.permute.xlu0 %1042  ;;  %v1082_v14 = vpack.c.bf16 %v2595_v12, %v2595_v12 }
 0xd5e   :  { %v2599_v15 = vmul.f32 %v2063_v29, %v1043_v13  ;;  %v2634_v13 = vsel %vm1054_vm8, %v2561_v5, %v2558_v41  ;;  %v1984_v41 = vld [vmem:[%s2939_s3] sm:$0xff]  }
 0xd5f   :  { %1086 = vrot.lane.b32.xlu1 %v1082_v14, %s2122_s21  ;;  %v1985_v5 = vld [vmem:[%s2940_s4] sm:$0xff]  }
 0xd60   :  { %v2607_v16 = vsel %vm1061_vm11, %v2599_v15, %v2531_v7  ;;  %v1798_v7 = vld [vmem:[%s2941_s1 + $0xa] sm:$0x3] }
 0xd61   :  { %v1140_v3 = vpack.c.bf16 %v2607_v16, %v2607_v16 }
 0xd63   :  { %1144 = vrot.lane.b32.xlu0 %v1140_v3, %s2122_s21 }
 0xdd1   :  { %v1087_v17 = vpop.permute.xlu1 %1086 }
 0xdd2   :  { %1929 = vmatmul.mubr.msk.bf16.vlgmr.msra.gmra.mrb[20].mxu0 %vm90_vm2, %v1087_v17 }
 0xdd3   :  { %1940 = vmatprep.mubr.msk.bf16.mxu0 %vm2117_vm1, %v2116_v0  ;;  %1939 = vmatpush3.bf16.msra.mxu0 %v1984_v41 }
 0xdd4   :  { %1950 = vmatprep.subr.bf16.mxu0 %v2116_v0 }
 0xdd5   :  { %v1145_v18 = vpop.permute.xlu0 %1144 }
 0xdd6   :  { %1935 = vmatmul.mubr.msk.bf16.vlgmr.msra.gmra.mrb[20].mxu1 %vm90_vm2, %v1145_v18 }
 0xdd7   :  { %1946 = vmatprep.mubr.msk.bf16.mxu1 %vm2117_vm1, %v2116_v0  ;;  %1945 = vmatpush3.bf16.msra.mxu1 %v1985_v5 }
 0xdd8   :  { %1956 = vmatprep.subr.bf16.mxu1 %v2116_v0 }
 0xea5   :  { %v1131_v19 = vpop.f32.mrb[20].mxu0 }
 0xea6   :  { %v1137_v20 = vadd.f32 %v1798_v7, %v1131_v19  ;;  %v1930_v22 = vpop.f32.mrb[21].mxu0 }
 0xea7   :  { %v1134_v23 = vpop.f32.mrb[22].mxu0 }
 0xea8   :  { %2068 = vtanh.f32 %v1137_v20  ;;  %v1931_v26 = vpop.f32.mrb[23].mxu0  ;;  %v1804_v29 = vmul.f32 -1.442695, %v1137_v20 }
 0xea9   :  { %v1189_v33 = vpop.f32.mrb[20].mxu1 }
 0xeaa   :  { %v1195_v34 = vadd.f32 %v1801_v24, %v1189_v33  ;;  %v1936_v43 = vpop.f32.mrb[21].mxu1 }
 0xeab   :  { %v1192_v37 = vpop.f32.mrb[22].mxu1 }
 0xeac   :  { %2070 = vtanh.f32 %v1195_v34  ;;  %v1937_v44 = vpop.f32.mrb[23].mxu1  ;;  %v1805_v40 = vmul.f32 -1.442695, %v1195_v34 }
 0xead   :  { %2072 = vpow2.f32 %v1804_v29 }
 0xeae   :  { %2074 = vpow2.f32 %v1805_v40 }
 0xeb2   :  { %v2069_v21 = vpop.eup %2068 }
 0xeb3   :  { %1205 = vrot.lane.b32.xlu1 %v2069_v21, %s2120_s14 }
 0xeb6   :  { %v2071_v60 = vpop.eup %2070 }
 0xeb7   :  { %1229 = vrot.lane.b32.xlu0 %v2071_v60, %s2120_s14  ;;  %v2073_v42 = vpop.eup %2072 }
 0xeb8   :  { %v1199_v2 = vadd.f32 1.0, %v2073_v42  ;;  %v2075_v4 = vpop.eup %2074  ;;  %v1813_v42 = vld [vmem:[%s2942_s2 + $0x2] sm:$0x3] }
 0xeb9   :  { %v1223_v39 = vadd.f32 1.0, %v2075_v4 }
 0xeba   :  { %2076 = vrcp.f32 %v1199_v2 }
 0xebb   :  { %2078 = vrcp.f32 %v1223_v39 }
 0xec4   :  { %v2077_v57 = vpop.eup %2076 }
 0xec5   :  { %v2079_v30 = vpop.eup %2078  ;;  %v1203_v14 = vmul.f32 %v2077_v57, %v2634_v13 }
 0xf25   :  { %v1206_v35 = vpop.permute.xlu1 %1205 }
 0xf26   :  { %v1208_v53 = vmul.f32 %v2077_v57, %v1206_v35 }
 0xf28   :  { %1210 = vrot.lane.b32.xlu1 %v1208_v53, %s2118_s9 }
 0xf29   :  { %v1230_v62 = vpop.permute.xlu0 %1229 }
 0xf2a   :  { %v1232_v10 = vmul.f32 %v2079_v30, %v1230_v62 }
 0xf2c   :  { %1250 = vperm.xlu1 %1971, %v2391_v27   ;;  %1234 = vrot.lane.b32.xlu0 %v1232_v10, %s2118_s9  ;;  %v2643_v27 = vsel %vm1061_vm11, %v2571_v8, %v2567_v32 }
 0xf30   :  { %1257 = vperm.xlu0 %1970, %v2385_v25   ;;  %v1227_v25 = vmul.f32 %v2079_v30, %v2643_v27 }
 0xf9a   :  { %v1211_v3 = vpop.permute.xlu1 %1210 }
 0xf9b   :  { %v2637_v17 = vadd.f32 %v1211_v3, %v1203_v14 }
 0xf9d   :  { %2080 = vtanh.f32 %v2637_v17 }
 0xf9e   :  { %v1235_v18 = vpop.permute.xlu0 %1234 }
 0xf9f   :  { %v2647_v7 = vadd.f32 %v1235_v18, %v1227_v25 }
 0xfa1   :  { %2082 = vtanh.f32 %v2647_v7 }
 0xfa7   :  { %v2081_v32 = vpop.eup %2080 }
 0xfa8   :  { %1216 = vrot.lane.b32.xlu1 %v2081_v32, %s2118_s9 }
 0xfab   :  { %v2083_v8 = vpop.eup %2082  ;;  %v2660_v19 = vpop.permute.xlu1 %1250 }
 0xfac   :  { %1240 = vrot.lane.b32.xlu0 %v2083_v8, %s2118_s9  ;;  %vm1252_vm12 = vcmp.eq.s32.totalorder %v2660_v19, 1 }
 0xfaf   :  { %v2662_v20 = vpop.permute.xlu0 %1257 }
 0xfb0   :  { %vm1259_vm15 = vcmp.eq.s32.totalorder %v2662_v20, 1 }
0x101a   :  { %v1217_v22 = vpop.permute.xlu1 %1216 }
0x101b   :  { %v2664_v23 = vmul.f32 %v2077_v57, %v1217_v22 }
0x101d   :  { %v2671_v24 = vsel %vm1252_vm12, %v2664_v23, %v2595_v12 }
0x101e   :  { %v1241_v26 = vpop.permute.xlu0 %1240  ;;  %v1280_v33 = vpack.c.bf16 %v2671_v24, %v2671_v24 }
0x101f   :  { %v2675_v34 = vmul.f32 %v2079_v30, %v1241_v26 }
0x1020   :  { %1284 = vrot.lane.b32.xlu1 %v1280_v33, %s2122_s21  ;;  %v2710_v33 = vsel %vm1252_vm12, %v2637_v17, %v2634_v13  ;;  %v1986_v13 = vld [vmem:[%s2939_s3] sm:$0xff]  }
0x1021   :  { %v2683_v43 = vsel %vm1259_vm15, %v2675_v34, %v2607_v16  ;;  %v1810_v16 = vld [vmem:[%s2941_s1 + $0xc] sm:$0x3]  ;;  %v1987_v17 = vld [vmem:[%s2940_s4] sm:$0xff]   ;;  %v1269_v48 = vsel %vm1259_vm15, %v2675_v34, 0.0 }
0x1022   :  { %v1338_v12 = vpack.c.bf16 %v2683_v43, %v2683_v43 }
0x1024   :  { %1342 = vrot.lane.b32.xlu0 %v1338_v12, %s2122_s21 }
0x1092   :  { %v1285_v37 = vpop.permute.xlu1 %1284 }
0x1093   :  { %1941 = vmatmul.mubr.msk.bf16.vlgmr.msra.gmra.mrb[24].mxu0 %vm90_vm2, %v1285_v37 }
0x1094   :  { %1952 = vmatprep.mubr.msk.bf16.mxu0 %vm2117_vm1, %v2116_v0  ;;  %1951 = vmatpush3.bf16.msra.mxu0 %v1986_v13 }
0x1096   :  { %v1343_v44 = vpop.permute.xlu0 %1342 }
0x1097   :  { %1947 = vmatmul.mubr.msk.bf16.vlgmr.msra.gmra.mrb[24].mxu1 %vm90_vm2, %v1343_v44 }
0x1098   :  { %1958 = vmatprep.mubr.msk.bf16.mxu1 %vm2117_vm1, %v2116_v0  ;;  %1957 = vmatpush3.bf16.msra.mxu1 %v1987_v17 }
0x1166   :  { %v1329_v21 = vpop.f32.mrb[24].mxu0 }
0x1167   :  { %v1335_v60 = vadd.f32 %v1810_v16, %v1329_v21  ;;  %v1942_v29 = vpop.f32.mrb[25].mxu0 }
0x1168   :  { %v1332_v40 = vpop.f32.mrb[26].mxu0 }
0x1169   :  { %2084 = vtanh.f32 %v1335_v60  ;;  %v1943_v2 = vpop.f32.mrb[27].mxu0  ;;  %v1816_v62 = vmul.f32 -1.442695, %v1335_v60 }
0x116a   :  { %v1387_v4 = vpop.f32.mrb[24].mxu1 }
0x116b   :  { %v1393_v39 = vadd.f32 %v1813_v42, %v1387_v4  ;;  %v1948_v57 = vpop.f32.mrb[25].mxu1 }
0x116c   :  { %v1390_v35 = vpop.f32.mrb[26].mxu1 }
0x116d   :  { %2086 = vtanh.f32 %v1393_v39  ;;  %v1949_v0 = vpop.f32.mrb[27].mxu1  ;;  %v1817_v10 = vmul.f32 -1.442695, %v1393_v39 }
0x116e   :  { %2088 = vpow2.f32 %v1816_v62 }
0x116f   :  { %2090 = vpow2.f32 %v1817_v10 }
0x1173   :  { %v2085_v53 = vpop.eup %2084 }
0x1174   :  { %1403 = vrot.lane.b32.xlu1 %v2085_v53, %s2120_s14 }
0x1177   :  { %v2087_v30 = vpop.eup %2086 }
0x1178   :  { %1427 = vrot.lane.b32.xlu0 %v2087_v30, %s2120_s14  ;;  %v2089_v14 = vpop.eup %2088  ;;  %v1822_v30 = vld [vmem:[%s2941_s1 + $0xe] sm:$0x3]  ;;  %s2123_s1 = smov 112  }
0x1179   :  { %v1397_v3 = vadd.f32 1.0, %v2089_v14  ;;  %v2091_v25 = vpop.eup %2090 }
0x117a   :  { %v1421_v18 = vadd.f32 1.0, %v2091_v25 }
0x117b   :  { %2092 = vrcp.f32 %v1397_v3  ;;  %v1534_v3 = vld [vmem:[%s2942_s2] sm:$0x3] }
0x117c   :  { %2094 = vrcp.f32 %v1421_v18 }
0x1185   :  { %v2093_v41 = vpop.eup %2092 }
0x1186   :  { %v2095_v8 = vpop.eup %2094  ;;  %v1401_v12 = vmul.f32 %v2093_v41, %v2710_v33 }
0x11e6   :  { %v1404_v5 = vpop.permute.xlu1 %1403 }
0x11e7   :  { %v1406_v32 = vmul.f32 %v2093_v41, %v1404_v5 }
0x11e9   :  { %1408 = vrot.lane.b32.xlu1 %v1406_v32, %s2118_s9 }
0x11ea   :  { %v1428_v22 = vpop.permute.xlu0 %1427 }
0x11eb   :  { %v1430_v26 = vmul.f32 %v2095_v8, %v1428_v22 }
0x11ed   :  { %1448 = vperm.xlu1 %1971, %v2307_v31   ;;  %1432 = vrot.lane.b32.xlu0 %v1430_v26, %s2118_s9  ;;  %v2719_v31 = vsel %vm1259_vm15, %v2647_v7, %v2643_v27 }
0x11f1   :  { %1455 = vperm.xlu0 %1970, %v2301_v28   ;;  %v1425_v28 = vmul.f32 %v2095_v8, %v2719_v31 }
0x125b   :  { %v1409_v37 = vpop.permute.xlu1 %1408 }
0x125c   :  { %v2713_v44 = vadd.f32 %v1409_v37, %v1401_v12 }
0x125e   :  { %2096 = vtanh.f32 %v2713_v44 }
0x125f   :  { %v1433_v16 = vpop.permute.xlu0 %1432 }
0x1260   :  { %v2723_v21 = vadd.f32 %v1433_v16, %v1425_v28 }
0x1262   :  { %2098 = vtanh.f32 %v2723_v21 }
0x1268   :  { %v2097_v27 = vpop.eup %2096 }
0x1269   :  { %1414 = vrot.lane.b32.xlu1 %v2097_v27, %s2118_s9 }
0x126c   :  { %v2099_v7 = vpop.eup %2098  ;;  %v2734_v60 = vpop.permute.xlu1 %1448 }
0x126d   :  { %1438 = vrot.lane.b32.xlu0 %v2099_v7, %s2118_s9  ;;  %vm1450_vm1 = vcmp.eq.s32.totalorder %v2734_v60, 1 }
0x1270   :  { %v2736_v29 = vpop.permute.xlu0 %1455 }
0x1271   :  { %vm1457_vm3 = vcmp.eq.s32.totalorder %v2736_v29, 1 }
0x12db   :  { %v1415_v40 = vpop.permute.xlu1 %1414 }
0x12dc   :  { %v2738_v42 = vmul.f32 %v2093_v41, %v1415_v40 }
0x12de   :  { %v2745_v2 = vsel %vm1450_vm1, %v2738_v42, %v2671_v24  ;;  %v1460_v45 = vsel %vm1450_vm1, %v2738_v42, 0.0 }
0x12df   :  { %v1439_v4 = vpop.permute.xlu0 %1438  ;;  %v1478_v39 = vpack.c.bf16 %v2745_v2, %v2745_v2 }
0x12e0   :  { %v2749_v57 = vmul.f32 %v2095_v8, %v1439_v4 }
0x12e1   :  { %1482 = vrot.lane.b32.xlu1 %v1478_v39, %s2122_s21 }
0x12e2   :  { %v2757_v35 = vsel %vm1457_vm3, %v2749_v57, %v2683_v43 }
0x12e3   :  { %v1535_v24 = vpack.c.bf16 %v2757_v35, %v2757_v35 }
0x12e5   :  { %1539 = vrot.lane.b32.xlu0 %v1535_v24, %s2122_s21 }
0x1353   :  { %v1483_v0 = vpop.permute.xlu1 %1482 }
0x1354   :  { %1953 = vmatmul.mubr.msk.bf16.vlgmr.msra.gmra.mrb[28].mxu0 %vm90_vm2, %v1483_v0  ;;  %v1452_v0 = vsel %vm1450_vm1, %v2713_v44, %v2710_v33  ;;  %v272_v33 = vsel %vm254_vm5, %v2262_v54, 0.0  ;;  %v470_v44 = vsel %vm460_vm9, %v2344_v49, 0.0  ;;  %v477_v54 = vsel %vm467_vm10, %v2355_v56, 0.0 }
0x1355   :  { %v1262_v49 = vsel %vm1252_vm12, %v2664_v23, 0.0  ;;  %v1071_v56 = vsel %vm1061_vm11, %v2599_v15, 0.0 }
0x1357   :  { %v1540_v53 = vpop.permute.xlu0 %1539 }
0x1358   :  { %1959 = vmatmul.mubr.msk.bf16.vlgmr.msra.gmra.mrb[28].mxu1 %vm90_vm2, %v1540_v53 }
0x1427   :  { %v1527_v62 = vpop.f32.mrb[28].mxu0 }
0x1428   :  { %v1533_v10 = vadd.f32 %v1822_v30, %v1527_v62  ;;  %v1954_v14 = vpop.f32.mrb[29].mxu0 }
0x1429   :  { %v1530_v43 = vpop.f32.mrb[30].mxu0 }
0x142a   :  { %2100 = vtanh.f32 %v1533_v10  ;;  %v1955_v25 = vpop.f32.mrb[31].mxu0  ;;  %v1827_v12 = vmul.f32 -1.442695, %v1533_v10  ;;  %v2784_v10 = vsel %vm1457_vm3, %v2723_v21, %v2719_v31  ;;  %v279_v31 = vsel %vm265_vm6, %v2272_v59, 0.0 }
0x142b   :  { %v1584_v18 = vpop.f32.mrb[28].mxu1  ;;  %v675_v59 = vsel %vm665_vm14, %v2439_v61, 0.0  ;;  %v1467_v61 = vsel %vm1457_vm3, %v2749_v57, 0.0 }
0x142c   :  { %v1590_v41 = vadd.f32 %v1584_v18, %v1534_v3  ;;  %v1960_v5 = vpop.f32.mrb[29].mxu1 }
0x142d   :  { %v1587_v32 = vpop.f32.mrb[30].mxu1 }
0x142e   :  { %2102 = vtanh.f32 %v1590_v41  ;;  %v1961_v8 = vpop.f32.mrb[31].mxu1  ;;  %v1828_v37 = vmul.f32 -1.442695, %v1590_v41 }
0x142f   :  { %2104 = vpow2.f32 %v1827_v12 }
0x1430   :  { %2106 = vpow2.f32 %v1828_v37 }
0x1434   :  { %v2101_v22 = vpop.eup %2100 }
0x1435   :  { %1600 = vrot.lane.b32.xlu1 %v2101_v22, %s2120_s14 }
0x1438   :  { %v2103_v26 = vpop.eup %2102 }
0x1439   :  { %1624 = vrot.lane.b32.xlu0 %v2103_v26, %s2120_s14  ;;  %v2105_v28 = vpop.eup %2104 }
0x143a   :  { %v1594_v16 = vadd.f32 1.0, %v2105_v28  ;;  %v2107_v13 = vpop.eup %2106 }
0x143b   :  { %v1618_v17 = vadd.f32 1.0, %v2107_v13 }
0x143c   :  { %2108 = vrcp.f32 %v1594_v16 }
0x143d   :  { %2110 = vrcp.f32 %v1618_v17 }
0x1446   :  { %v2109_v27 = vpop.eup %2108 }
0x1447   :  { %v2111_v4 = vpop.eup %2110  ;;  %v1598_v53 = vmul.f32 %v2109_v27, %v1452_v0 }
0x14a7   :  { %v1601_v7 = vpop.permute.xlu1 %1600 }
0x14a8   :  { %v1603_v40 = vmul.f32 %v2109_v27, %v1601_v7 }
0x14aa   :  { %1605 = vrot.lane.b32.xlu1 %v1603_v40, %s2118_s9 }
0x14ab   :  { %v1625_v39 = vpop.permute.xlu0 %1624 }
0x14ac   :  { %v1627_v24 = vmul.f32 %v2111_v4, %v1625_v39 }
0x14ae   :  { %1645 = vperm.xlu1 %1971, %v2231_v38   ;;  %1629 = vrot.lane.b32.xlu0 %v1627_v24, %s2118_s9  ;;  %v1622_v38 = vmul.f32 %v2111_v4, %v2784_v10 }
0x14b2   :  { %1652 = vperm.xlu0 %1970, %v2225_v36  }
0x151c   :  { %v1606_v30 = vpop.permute.xlu1 %1605 }
0x151d   :  { %v1608_v62 = vadd.f32 %v1606_v30, %v1598_v53 }
0x151f   :  { %2112 = vtanh.f32 %v1608_v62 }
0x1520   :  { %v1630_v14 = vpop.permute.xlu0 %1629 }
0x1521   :  { %v1632_v43 = vadd.f32 %v1630_v14, %v1622_v38 }
0x1523   :  { %2114 = vtanh.f32 %v1632_v43 }
0x1529   :  { %v2113_v36 = vpop.eup %2112 }
0x152a   :  { %1611 = vrot.lane.b32.xlu1 %v2113_v36, %s2118_s9 }
0x152d   :  { %v2115_v3 = vpop.eup %2114  ;;  %v1646_v55 = vpop.permute.xlu1 %1645 }
0x152e   :  { %274 = vrot.lane.b32.xlu1 %v272_v33, %s2122_s21  ;;  %1635 = vrot.lane.b32.xlu0 %v2115_v3, %s2118_s9  ;;  %vm1647_vm2 = vcmp.eq.s32.totalorder %v1646_v55, 1 }
0x152f   :  { %v1649_v50 = vsel %vm1647_vm2, %v1608_v62, %v1452_v0 }
0x1531   :  { %v1653_v1 = vpop.permute.xlu0 %1652 }
0x1532   :  { %472 = vrot.lane.b32.xlu1 %v470_v44, %s2122_s21  ;;  %281 = vrot.lane.b32.xlu0 %v279_v31, %s2122_s21  ;;  %vm1654_vm5 = vcmp.eq.s32.totalorder %v1653_v1, 1 }
0x1533   :  { %v1656_v21 = vsel %vm1654_vm5, %v1632_v43, %v2784_v10 }
0x1536   :  { %670 = vrot.lane.b32.xlu1 %v668_v52, %s2122_s21  ;;  %479 = vrot.lane.b32.xlu0 %v477_v54, %s2122_s21 }
0x153a   :  { %868 = vrot.lane.b32.xlu1 %v866_v51, %s2122_s21  ;;  %677 = vrot.lane.b32.xlu0 %v675_v59, %s2122_s21 }
0x153e   :  { %1066 = vrot.lane.b32.xlu1 %v1064_v46, %s2122_s21  ;;  %875 = vrot.lane.b32.xlu0 %v873_v47, %s2122_s21 }
0x1542   :  { %1264 = vrot.lane.b32.xlu1 %v1262_v49, %s2122_s21  ;;  %1073 = vrot.lane.b32.xlu0 %v1071_v56, %s2122_s21 }
0x1546   :  { %1462 = vrot.lane.b32.xlu1 %v1460_v45, %s2122_s21  ;;  %1271 = vrot.lane.b32.xlu0 %v1269_v48, %s2122_s21 }
0x154a   :  { %1469 = vrot.lane.b32.xlu0 %v1467_v61, %s2122_s21 }
0x154e   :  { %1676 = vrot.lane.b32.xlu0 %v1649_v50, %s2123_s1 }
0x159c   :  { %v1612_v58 = vpop.permute.xlu1 %1611 }
0x159d   :  { %v1614_v6 = vmul.f32 %v2109_v27, %v1612_v58 }
0x159f   :  { %v1657_v9 = vsel %vm1647_vm2, %v1614_v6, 0.0  ;;  %v1648_v20 = vsel %vm1647_vm2, %v1614_v6, %v2745_v2 }
0x15a0   :  { %1659 = vrot.lane.b32.xlu1 %v1657_v9, %s2122_s21  ;;  %v275_v63 = vpop.permute.xlu1 %274  ;;  %v1636_v11 = vpop.permute.xlu0 %1635 }
0x15a1   :  { %278 = vst.msk [vmem:[%s2944_s5] sm:$0x3] %vm65_vm0, %v275_v63  ;;  %v1638_v15 = vmul.f32 %v2111_v4, %v1636_v11 }
0x15a3   :  { %v1664_v19 = vsel %vm1654_vm5, %v1638_v15, 0.0  ;;  %v1655_v60 = vsel %vm1654_vm5, %v1638_v15, %v2757_v35 }
0x15a4   :  { %1671 = vrot.lane.b32.xlu1 %v1648_v20, %s2122_s21  ;;  %v473_v23 = vpop.permute.xlu1 %472  ;;  %1666 = vrot.lane.b32.xlu0 %v1664_v19, %s2122_s21  ;;  %v282_v34 = vpop.permute.xlu0 %281 }
0x15a5   :  { %1760 = vst.msk [vmem:[%s2944_s5 + $0x2] sm:$0x3] %vm65_vm0, %v473_v23  ;;  %1749 = vst.msk [vmem:[%s2945_s6 + $0xe] sm:$0x3] %vm65_vm0, %v282_v34 }
0x15a8   :  { %v671_v29 = vpop.permute.xlu1 %670  ;;  %1686 = vrot.lane.b32.xlu0 %v1656_v21, %s2123_s1  ;;  %1681 = vrot.lane.b32.xlu1 %v1655_v60, %s2122_s21  ;;  %v480_v42 = vpop.permute.xlu0 %479 }
0x15a9   :  { %1772 = vst.msk [vmem:[%s2944_s5 + $0x4] sm:$0x3] %vm65_vm0, %v671_v29  ;;  %1761 = vst.msk [vmem:[%s2945_s6 + $0xc] sm:$0x3] %vm65_vm0, %v480_v42 }
0x15ac   :  { %v869_v2 = vpop.permute.xlu1 %868  ;;  %v678_v57 = vpop.permute.xlu0 %677 }
0x15ad   :  { %1784 = vst.msk [vmem:[%s2944_s5 + $0x6] sm:$0x3] %vm65_vm0, %v869_v2  ;;  %1773 = vst.msk [vmem:[%s2945_s6 + $0xa] sm:$0x3] %vm65_vm0, %v678_v57 }
0x15b0   :  { %v1067_v35 = vpop.permute.xlu1 %1066  ;;  %v876_v25 = vpop.permute.xlu0 %875 }
0x15b1   :  { %1796 = vst.msk [vmem:[%s2944_s5 + $0x8] sm:$0x3] %vm65_vm0, %v1067_v35  ;;  %1785 = vst.msk [vmem:[%s2945_s6 + $0x8] sm:$0x3] %vm65_vm0, %v876_v25 }
0x15b4   :  { %v1265_v18 = vpop.permute.xlu1 %1264  ;;  %v1074_v41 = vpop.permute.xlu0 %1073 }
0x15b5   :  { %1808 = vst.msk [vmem:[%s2944_s5 + $0xa] sm:$0x3] %vm65_vm0, %v1265_v18  ;;  %1797 = vst.msk [vmem:[%s2945_s6 + $0x6] sm:$0x3] %vm65_vm0, %v1074_v41 }
0x15b8   :  { %v1463_v5 = vpop.permute.xlu1 %1462  ;;  %v1272_v32 = vpop.permute.xlu0 %1271 }
0x15b9   :  { %1820 = vst.msk [vmem:[%s2944_s5 + $0xc] sm:$0x3] %vm65_vm0, %v1463_v5  ;;  %1809 = vst.msk [vmem:[%s2945_s6 + $0x4] sm:$0x3] %vm65_vm0, %v1272_v32 }
0x15bc   :  { %v1470_v8 = vpop.permute.xlu0 %1469 }
0x15bd   :  { %1821 = vst.msk [vmem:[%s2945_s6 + $0x2] sm:$0x3] %vm65_vm0, %v1470_v8 }
0x15c0   :  { %v1677_v22 = vpop.permute.xlu0 %1676 }
0x15c1   :  { %1679 = vst.msk [vmem:[#allocation2 + $0x2] sm:$0x3] %vm65_vm0, %v1677_v22  ;;  %1693 = vst.msk [vmem:[%s2946_s8] sm:$0x3] %vm65_vm0, %v1677_v22 }
0x1612   :  { %v1660_v26 = vpop.permute.xlu1 %1659 }
0x1613   :  { %1831 = vst.msk [vmem:[%s2944_s5 + $0xe] sm:$0x3] %vm65_vm0, %v1660_v26 }
0x1616   :  { %v1672_v12 = vpop.permute.xlu1 %1671  ;;  %v1667_v37 = vpop.permute.xlu0 %1666 }
0x1617   :  { %1674 = vst.msk [vmem:[#allocation2] sm:$0x3] %vm65_vm0, %v1672_v12  ;;  %1690 = vst.msk [vmem:[%s2947_s7] sm:$0x3] %vm65_vm0, %v1672_v12 }
0x1618   :  { %1669 = vst.msk [vmem:[%s2945_s6] sm:$0x3] %vm65_vm0, %v1667_v37 }
0x161a   :  { %v1682_v28 = vpop.permute.xlu1 %1681  ;;  %v1687_v16 = vpop.permute.xlu0 %1686 }
0x161b   :  { %1684 = vst.msk [vmem:[#allocation2 + $0x4] sm:$0x3] %vm65_vm0, %v1682_v28  ;;  %1832 = vst.msk [vmem:[%s2947_s7 + $0x2] sm:$0x3] %vm65_vm0, %v1682_v28 }
0x161c   :  { %1689 = vst.msk [vmem:[#allocation2 + $0x6] sm:$0x3] %vm65_vm0, %v1687_v16  ;;  %1833 = vst.msk [vmem:[%s2946_s8 + $0x2] sm:$0x3] %vm65_vm0, %v1687_v16 }

</bundles_post_ra>
